<compile_context>
chip_gen: v5e
topology: v5e:2x2
jax: 0.10.0
libtpu: 0.0.40
codegen_flags: <defaults>
</compile_context>

<pallas_src>
import jax
import jax.numpy as jnp
from jax.experimental import pallas as pl
from jax.experimental.pallas import tpu as pltpu

EPS = 1e-5


# ------------------------------ Pallas kernels ------------------------------ #

def _write_bn_stats(st_ref, acc):
    """BN partials: row 0 = column sums, row 1 = column sums of squares (f32).
    Computed as ones(1,M) @ acc on the MXU (keeps the reduction off the XLU) and written
    row-by-row -- no concatenate / reshape relayout."""
    m = acc.shape[0]
    ones = jnp.ones((1, m), jnp.float32)
    st_ref[0, 0:1, :] = jnp.dot(ones, acc, preferred_element_type=jnp.float32)
    st_ref[0, 1:2, :] = jnp.dot(ones, acc * acc, preferred_element_type=jnp.float32)


def _conv1_kernel(xp_ref, w_ref, z_ref, st_ref):
    """3x3 stride-2 conv of one image from its 4 stride-2 phases + BN partial stats.

    xp_ref: (1, 4, Ho+1, Wo+1, Cin) f32 -- phase p=2*rh+rw holds xpad[2i+rh, 2j+rw]
    w_ref : (9, Cin, Cout) bf16          -- tap t = 3*kh + kw
    z_ref : (1, Ho, Wo, Cout) bf16       -- pre-BN conv output
    st_ref: (1, 2, Cout) f32
    """
    _, _, hq, wq, cin = xp_ref.shape
    ho, wo = hq - 1, wq - 1
    cout = z_ref.shape[-1]
    acc = jnp.zeros((ho * wo, cout), jnp.float32)
    for kh in range(3):
        for kw in range(3):
            p = 2 * (kh % 2) + (kw % 2)      # phase holding rows 2i+(kh%2), cols 2j+(kw%2)
            qh, qw = kh // 2, kw // 2        # +1 row/col offset inside the phase for kh/kw == 2
            patch = xp_ref[0, p, qh:qh + ho, qw:qw + wo, :]
            patch = patch.reshape(ho * wo, cin).astype(jnp.bfloat16)
            acc = acc + jnp.dot(patch, w_ref[3 * kh + kw],
                                preferred_element_type=jnp.float32)
    z_ref[0] = acc.reshape(ho, wo, cout).astype(z_ref.dtype)
    _write_bn_stats(st_ref, acc)


def _conv2_kernel(z1_ref, s1_ref, b1_ref, w_ref, z2_ref, st_ref, hpad_ref):
    """Fused BN1-apply + ReLU + 3x3 stride-1 conv2 + BN2 partial stats.

    z1_ref  : (1, Ho, Wo, C) bf16 pre-BN conv1 output
    s1 / b1 : (1, C) f32 BN1 scale / shift
    w_ref   : (9, C, Cout) bf16
    z2_ref  : (1, Ho, Wo, Cout) bf16 pre-BN conv2 output
    st_ref  : (1, 2, Cout) f32
    hpad_ref: VMEM (Ho+2, Wo+2, C) f32 scratch -- zero-haloed h1 tile (conv2 pad = 1)
    """
    _, ho, wo, c = z1_ref.shape
    cout = z2_ref.shape[-1]
    hpad_ref[...] = jnp.zeros_like(hpad_ref)
    h1 = jnp.maximum(
        z1_ref[0].astype(jnp.float32) * s1_ref[...].reshape(1, 1, c)
        + b1_ref[...].reshape(1, 1, c), 0.0)
    hpad_ref[1:ho + 1, 1:wo + 1, :] = h1
    acc = jnp.zeros((ho * wo, cout), jnp.float32)
    for kh in range(3):
        for kw in range(3):
            patch = hpad_ref[kh:kh + ho, kw:kw + wo, :]
            patch = patch.reshape(ho * wo, c).astype(jnp.bfloat16)
            acc = acc + jnp.dot(patch, w_ref[3 * kh + kw],
                                preferred_element_type=jnp.float32)
    z2_ref[0] = acc.reshape(ho, wo, cout).astype(z2_ref.dtype)
    _write_bn_stats(st_ref, acc)


def _out_kernel(z2_ref, xp_ref, wd_ref, s2_ref, b2_ref, o_ref):
    """out = relu(BN2(z2) + 1x1-stride-2-conv(x)).

    The residual's 1x1 stride-2 patches are the conv1 centre-tap phase (phase (1,1) of xp);
    with tiny Cin the 1x1 conv is Cin broadcast-FMAs on the VPU (no padded-K MXU matmul).
    """
    _, ho, wo, cout = z2_ref.shape
    cin = wd_ref.shape[0]
    y = (z2_ref[0].astype(jnp.float32) * s2_ref[...].reshape(1, 1, cout)
         + b2_ref[...].reshape(1, 1, cout))
    xs = xp_ref[0, 0, 0:ho, 0:wo, :]          # (Ho, Wo, Cin) == x[::2, ::2, :]
    wd = wd_ref[...]                          # (Cin, Cout) f32
    # TODO(synk): switch to a bf16 MXU matmul when Cin is large enough to fill the MXU.
    for ci in range(cin):
        y = y + xs[:, :, ci:ci + 1] * wd[ci:ci + 1, :].reshape(1, 1, cout)
    o_ref[0] = jnp.maximum(y, 0.0).astype(o_ref.dtype)


# --------------------------- pallas_call wrappers ---------------------------- #

def _compiler_params():
    # Explicit scoped-VMEM budget (fits v5e/v6e 128 MiB and v7x 64 MiB physical VMEM);
    # the per-step working set here is only tens of KiB.
    return pltpu.CompilerParams(dimension_semantics=("parallel",),
                                vmem_limit_bytes=32 * 1024 * 1024)


def _conv1_call(xp, w1, n, ho, wo, cout):
    _, _, hq, wq, cin = xp.shape
    cost = pl.CostEstimate(
        flops=2 * n * ho * wo * 9 * cin * cout, transcendentals=0,
        bytes_accessed=int(xp.size * 4 + w1.size * 2
                           + n * ho * wo * cout * 2 + n * 2 * cout * 4))
    return pl.pallas_call(
        _conv1_kernel,
        out_shape=(jax.ShapeDtypeStruct((n, ho, wo, cout), jnp.bfloat16),
                   jax.ShapeDtypeStruct((n, 2, cout), jnp.float32)),
        grid_spec=pltpu.PrefetchScalarGridSpec(
            num_scalar_prefetch=0,
            grid=(n,),
            in_specs=[
                pl.BlockSpec((1, 4, hq, wq, cin), lambda i: (i, 0, 0, 0, 0)),
                pl.BlockSpec((9, cin, cout), lambda i: (0, 0, 0)),   # resident weight taps
            ],
            out_specs=[
                pl.BlockSpec((1, ho, wo, cout), lambda i: (i, 0, 0, 0)),
                pl.BlockSpec((1, 2, cout), lambda i: (i, 0, 0)),
            ]),
        compiler_params=_compiler_params(),
        cost_estimate=cost,
    )(xp, w1)


def _conv2_call(z1, s1, b1, w2, n, ho, wo, cout):
    c = z1.shape[-1]
    cost = pl.CostEstimate(
        flops=2 * n * ho * wo * 9 * c * cout + 3 * n * ho * wo * c, transcendentals=0,
        bytes_accessed=int(z1.size * 2 + w2.size * 2
                           + n * ho * wo * cout * 2 + n * 2 * cout * 4))
    return pl.pallas_call(
        _conv2_kernel,
        out_shape=(jax.ShapeDtypeStruct((n, ho, wo, cout), jnp.bfloat16),
                   jax.ShapeDtypeStruct((n, 2, cout), jnp.float32)),
        grid_spec=pltpu.PrefetchScalarGridSpec(
            num_scalar_prefetch=0,
            grid=(n,),
            in_specs=[
                pl.BlockSpec((1, ho, wo, c), lambda i: (i, 0, 0, 0)),
                pl.BlockSpec((1, c), lambda i: (0, 0)),              # resident BN1 scale
                pl.BlockSpec((1, c), lambda i: (0, 0)),              # resident BN1 shift
                pl.BlockSpec((9, c, cout), lambda i: (0, 0, 0)),     # resident weight taps
            ],
            out_specs=[
                pl.BlockSpec((1, ho, wo, cout), lambda i: (i, 0, 0, 0)),
                pl.BlockSpec((1, 2, cout), lambda i: (i, 0, 0)),
            ],
            scratch_shapes=[pltpu.VMEM((ho + 2, wo + 2, c), jnp.float32)]),
        compiler_params=_compiler_params(),
        cost_estimate=cost,
    )(z1, s1, b1, w2)


def _out_call(z2, xp, wd, s2, b2, n, ho, wo, cout):
    _, _, hq, wq, cin = xp.shape
    return pl.pallas_call(
        _out_kernel,
        out_shape=jax.ShapeDtypeStruct((n, ho, wo, cout), jnp.float32),
        grid_spec=pltpu.PrefetchScalarGridSpec(
            num_scalar_prefetch=0,
            grid=(n,),
            in_specs=[
                pl.BlockSpec((1, ho, wo, cout), lambda i: (i, 0, 0, 0)),
                pl.BlockSpec((1, 1, hq, wq, cin), lambda i: (i, 3, 0, 0, 0)),  # phase (1,1)
                pl.BlockSpec((cin, cout), lambda i: (0, 0)),         # resident 1x1 weight
                pl.BlockSpec((1, cout), lambda i: (0, 0)),
                pl.BlockSpec((1, cout), lambda i: (0, 0)),
            ],
            out_specs=pl.BlockSpec((1, ho, wo, cout), lambda i: (i, 0, 0, 0))),
        compiler_params=_compiler_params(),
    )(z2, xp, wd, s2, b2)


# --------------------------------- JAX glue ---------------------------------- #

def _taps(w_oihw):
    """PyTorch (Cout, Cin, 3, 3) -> (9, Cin, Cout), tap index t = 3*kh + kw."""
    cout, cin = w_oihw.shape[0], w_oihw.shape[1]
    return jnp.transpose(w_oihw, (2, 3, 1, 0)).reshape(9, cin, cout)


def _bn_scale_shift(stats, m_real, gamma, beta):
    """Fold per-image (sum, sumsq) partials + gamma/beta into a per-channel BN scale/shift.
    One-pass variance (E[z^2]-E[z]^2) in f32 over exactly m_real rows (no padded rows exist);
    acceptable at the 5e-2 tolerance used here."""
    s = jnp.sum(stats[:, 0, :], axis=0)
    ss = jnp.sum(stats[:, 1, :], axis=0)
    mean = s / m_real
    var = ss / m_real - mean * mean            # biased variance (PyTorch training forward)
    inv = jax.lax.rsqrt(var + EPS)
    scale = gamma * inv
    shift = beta - mean * scale
    return (scale.reshape(1, -1).astype(jnp.float32),
            shift.reshape(1, -1).astype(jnp.float32))


def conv_res_block_forward(x_nchw, params):
    """Pallas implementation of ConvResBlock.forward (module default stride s=2)."""
    n, cin, h, w = x_nchw.shape
    cout = params["w1"].shape[0]
    s = 2
    ho = (h + 2 - 3) // s + 1
    wo = (w + 2 - 3) // s + 1
    hq, wq = ho + 1, wo + 1

    # Layout glue (1x traffic): NCHW->NHWC, pad=1 (rounded up to (2*hq, 2*wq)), then
    # space-to-depth into the 4 stride-2 phases:
    #   xp[n, 2*rh+rw, i, j, c] == xpad[n, 2*i+rh, 2*j+rw, c]
    x = jnp.transpose(x_nchw, (0, 2, 3, 1)).astype(jnp.float32)
    xpad = jnp.pad(x, ((0, 0), (1, 2 * hq - h - 1), (1, 2 * wq - w - 1), (0, 0)))
    xp = xpad.reshape(n, hq, 2, wq, 2, cin)
    xp = xp.transpose(0, 2, 4, 1, 3, 5).reshape(n, 4, hq, wq, cin)

    w1 = _taps(params["w1"]).astype(jnp.bfloat16)                         # (9, Cin,  Cout)
    w2 = _taps(params["w2"]).astype(jnp.bfloat16)                         # (9, Cout, Cout)
    wd = jnp.transpose(params["wd"][:, :, 0, 0], (1, 0)).astype(jnp.float32)  # (Cin, Cout)

    m = n * ho * wo   # exact BN sample count (no padded rows anywhere)

    # conv1 (stride-2, in-kernel tap gather from phases) + BN1 statistics
    z1, st1 = _conv1_call(xp, w1, n, ho, wo, cout)
    sc1, sh1 = _bn_scale_shift(st1, m, params["g1"], params["b1"])

    # BN1 apply + ReLU fused into conv2 (stride-1, zero-haloed VMEM scratch) + BN2 statistics
    z2, st2 = _conv2_call(z1, sc1, sh1, w2, n, ho, wo, cout)
    sc2, sh2 = _bn_scale_shift(st2, m, params["g2"], params["b2"])

    # BN2 apply + 1x1 stride-2 residual (reusing conv1 centre-tap phase) + final ReLU
    out = _out_call(z2, xp, wd, sc2, sh2, n, ho, wo, cout)
    return jnp.transpose(out, (0, 3, 1, 2))   # back to NCHW


# ---------------------------- pure-JAX reference ------------------------------ #

def ref_forward(x, params):
    dn = ("NCHW", "OIHW", "NCHW")

    def conv(xx, w, s, p):
        return jax.lax.conv_general_dilated(
            xx, w, (s, s), [(p, p), (p, p)], dimension_numbers=dn,
            precision=jax.lax.Precision.HIGHEST)

    def bn(xx, g, b):
        mean = jnp.mean(xx, axis=(0, 2, 3), keepdims=True)
        var = jnp.mean((xx - mean) ** 2, axis=(0, 2, 3), keepdims=True)
        return (xx - mean) * jax.lax.rsqrt(var + EPS) * g.reshape(1, -1, 1, 1) \
            + b.reshape(1, -1, 1, 1)

    h = jax.nn.relu(bn(conv(x, params["w1"], 2, 1), params["g1"], params["b1"]))
    h = bn(conv(h, params["w2"], 1, 1), params["g2"], params["b2"])
    r = conv(x, params["wd"], 2, 0)
    return jax.nn.relu(h + r)


# ----------------------------------- main ------------------------------------- #

if __name__ == "__main__":
    N, Cin, Cout, H, W = 2, 4, 8, 16, 16

    key = jax.random.PRNGKey(0)
    ks = jax.random.split(key, 8)
    params = {
        "w1": 0.1 * jax.random.normal(ks[0], (Cout, Cin, 3, 3), jnp.float32),
        "w2": 0.1 * jax.random.normal(ks[1], (Cout, Cout, 3, 3), jnp.float32),
        "wd": 0.1 * jax.random.normal(ks[2], (Cout, Cin, 1, 1), jnp.float32),
        "g1": 1.0 + 0.1 * jax.random.normal(ks[3], (Cout,), jnp.float32),
        "b1": 0.1 * jax.random.normal(ks[4], (Cout,), jnp.float32),
        "g2": 1.0 + 0.1 * jax.random.normal(ks[5], (Cout,), jnp.float32),
        "b2": 0.1 * jax.random.normal(ks[6], (Cout,), jnp.float32),
    }
    x = jax.random.normal(ks[7], (N, Cin, H, W), jnp.float32)

    out = jax.block_until_ready(jax.jit(conv_res_block_forward)(x, params))
    ref = jax.block_until_ready(ref_forward(x, params))

    assert out.shape == (N, Cout, H // 2, W // 2), out.shape
    err = float(jnp.max(jnp.abs(out - ref)))
    # bf16 MXU operands and bf16 z1/z2 intermediates (f32 accumulation and f32 BN statistics)
    # compared against an all-f32 HIGHEST-precision reference.
    assert err < 5e-2, err

    print("KERNEL_OK")
</pallas_src>

<mosaic_0001>
module attributes {stable_mosaic.version = 11 : i64} {
  func.func @_conv1_kernel(%arg0: i32, %arg1: memref<1x4x9x9x4xf32, #tpu.memory_space<vmem>>, %arg2: memref<9x4x8xbf16, #tpu.memory_space<vmem>>, %arg3: memref<1x8x8x8xbf16, #tpu.memory_space<vmem>>, %arg4: memref<1x2x8xf32, #tpu.memory_space<vmem>>) attributes {dimension_semantics = [#tpu.dimension_semantics<parallel>], iteration_bounds = array<i64: 2>, scalar_prefetch = 0 : i64, scratch_operands = 0 : i64, tpu.core_type = #tpu.core_type<tc>, window_params = [{transform_indices = @transform_0, window_bounds = array<i64: 1, 4, 9, 9, 4>}, {pipeline_mode = #tpu.pipeline_mode<synchronous>, transform_indices = @transform_1, window_bounds = array<i64: 9, 4, 8>}, {transform_indices = @transform_2, window_bounds = array<i64: 1, 8, 8, 8>}, {transform_indices = @transform_3, window_bounds = array<i64: 1, 2, 8>}]} {
    %cst = arith.constant 0.000000e+00 : f32
    %0 = vector.broadcast %cst : f32 to vector<64x8xf32>
    %c0 = arith.constant 0 : index
    %c0_0 = arith.constant 0 : index
    %c0_1 = arith.constant 0 : index
    %c0_2 = arith.constant 0 : index
    %c0_3 = arith.constant 0 : index
    %1 = vector.load %arg1[%c0, %c0_0, %c0_1, %c0_2, %c0_3] : memref<1x4x9x9x4xf32, #tpu.memory_space<vmem>>, vector<1x1x8x8x4xf32>
    %2 = vector.shape_cast %1 : vector<1x1x8x8x4xf32> to vector<8x8x4xf32>
    %3 = vector.shape_cast %2 : vector<8x8x4xf32> to vector<64x4xf32>
    %4 = arith.truncf %3 : vector<64x4xf32> to vector<64x4xbf16>
    %c0_4 = arith.constant 0 : index
    %c0_5 = arith.constant 0 : index
    %c0_6 = arith.constant 0 : index
    %5 = vector.load %arg2[%c0_4, %c0_5, %c0_6] : memref<9x4x8xbf16, #tpu.memory_space<vmem>>, vector<1x4x8xbf16>
    %6 = vector.shape_cast %5 : vector<1x4x8xbf16> to vector<4x8xbf16>
    %cst_7 = arith.constant dense<0.000000e+00> : vector<64x8xf32>
    %7 = tpu.matmul %4, %6, %cst_7 {dimension_numbers = #tpu.dot_dimension_numbers<[1], [0], [0], [1], [0, 0, 1, 1], [], []>} : vector<64x4xbf16>, vector<4x8xbf16>, vector<64x8xf32> -> vector<64x8xf32>
    %8 = arith.addf %0, %7 : vector<64x8xf32>
    %c0_8 = arith.constant 0 : index
    %c1 = arith.constant 1 : index
    %c0_9 = arith.constant 0 : index
    %c0_10 = arith.constant 0 : index
    %c0_11 = arith.constant 0 : index
    %9 = vector.load %arg1[%c0_8, %c1, %c0_9, %c0_10, %c0_11] : memref<1x4x9x9x4xf32, #tpu.memory_space<vmem>>, vector<1x1x8x8x4xf32>
    %10 = vector.shape_cast %9 : vector<1x1x8x8x4xf32> to vector<8x8x4xf32>
    %11 = vector.shape_cast %10 : vector<8x8x4xf32> to vector<64x4xf32>
    %12 = arith.truncf %11 : vector<64x4xf32> to vector<64x4xbf16>
    %c1_12 = arith.constant 1 : index
    %c0_13 = arith.constant 0 : index
    %c0_14 = arith.constant 0 : index
    %13 = vector.load %arg2[%c1_12, %c0_13, %c0_14] : memref<9x4x8xbf16, #tpu.memory_space<vmem>>, vector<1x4x8xbf16>
    %14 = vector.shape_cast %13 : vector<1x4x8xbf16> to vector<4x8xbf16>
    %cst_15 = arith.constant dense<0.000000e+00> : vector<64x8xf32>
    %15 = tpu.matmul %12, %14, %cst_15 {dimension_numbers = #tpu.dot_dimension_numbers<[1], [0], [0], [1], [0, 0, 1, 1], [], []>} : vector<64x4xbf16>, vector<4x8xbf16>, vector<64x8xf32> -> vector<64x8xf32>
    %16 = arith.addf %8, %15 : vector<64x8xf32>
    %c0_16 = arith.constant 0 : index
    %c0_17 = arith.constant 0 : index
    %c0_18 = arith.constant 0 : index
    %c1_19 = arith.constant 1 : index
    %c0_20 = arith.constant 0 : index
    %17 = vector.load %arg1[%c0_16, %c0_17, %c0_18, %c1_19, %c0_20] : memref<1x4x9x9x4xf32, #tpu.memory_space<vmem>>, vector<1x1x8x8x4xf32>
    %18 = vector.shape_cast %17 : vector<1x1x8x8x4xf32> to vector<8x8x4xf32>
    %19 = vector.shape_cast %18 : vector<8x8x4xf32> to vector<64x4xf32>
    %20 = arith.truncf %19 : vector<64x4xf32> to vector<64x4xbf16>
    %c2 = arith.constant 2 : index
    %c0_21 = arith.constant 0 : index
    %c0_22 = arith.constant 0 : index
    %21 = vector.load %arg2[%c2, %c0_21, %c0_22] : memref<9x4x8xbf16, #tpu.memory_space<vmem>>, vector<1x4x8xbf16>
    %22 = vector.shape_cast %21 : vector<1x4x8xbf16> to vector<4x8xbf16>
    %cst_23 = arith.constant dense<0.000000e+00> : vector<64x8xf32>
    %23 = tpu.matmul %20, %22, %cst_23 {dimension_numbers = #tpu.dot_dimension_numbers<[1], [0], [0], [1], [0, 0, 1, 1], [], []>} : vector<64x4xbf16>, vector<4x8xbf16>, vector<64x8xf32> -> vector<64x8xf32>
    %24 = arith.addf %16, %23 : vector<64x8xf32>
    %c0_24 = arith.constant 0 : index
    %c2_25 = arith.constant 2 : index
    %c0_26 = arith.constant 0 : index
    %c0_27 = arith.constant 0 : index
    %c0_28 = arith.constant 0 : index
    %25 = vector.load %arg1[%c0_24, %c2_25, %c0_26, %c0_27, %c0_28] : memref<1x4x9x9x4xf32, #tpu.memory_space<vmem>>, vector<1x1x8x8x4xf32>
    %26 = vector.shape_cast %25 : vector<1x1x8x8x4xf32> to vector<8x8x4xf32>
    %27 = vector.shape_cast %26 : vector<8x8x4xf32> to vector<64x4xf32>
    %28 = arith.truncf %27 : vector<64x4xf32> to vector<64x4xbf16>
    %c3 = arith.constant 3 : index
    %c0_29 = arith.constant 0 : index
    %c0_30 = arith.constant 0 : index
    %29 = vector.load %arg2[%c3, %c0_29, %c0_30] : memref<9x4x8xbf16, #tpu.memory_space<vmem>>, vector<1x4x8xbf16>
    %30 = vector.shape_cast %29 : vector<1x4x8xbf16> to vector<4x8xbf16>
    %cst_31 = arith.constant dense<0.000000e+00> : vector<64x8xf32>
    %31 = tpu.matmul %28, %30, %cst_31 {dimension_numbers = #tpu.dot_dimension_numbers<[1], [0], [0], [1], [0, 0, 1, 1], [], []>} : vector<64x4xbf16>, vector<4x8xbf16>, vector<64x8xf32> -> vector<64x8xf32>
    %32 = arith.addf %24, %31 : vector<64x8xf32>
    %c0_32 = arith.constant 0 : index
    %c3_33 = arith.constant 3 : index
    %c0_34 = arith.constant 0 : index
    %c0_35 = arith.constant 0 : index
    %c0_36 = arith.constant 0 : index
    %33 = vector.load %arg1[%c0_32, %c3_33, %c0_34, %c0_35, %c0_36] : memref<1x4x9x9x4xf32, #tpu.memory_space<vmem>>, vector<1x1x8x8x4xf32>
    %34 = vector.shape_cast %33 : vector<1x1x8x8x4xf32> to vector<8x8x4xf32>
    %35 = vector.shape_cast %34 : vector<8x8x4xf32> to vector<64x4xf32>
    %36 = arith.truncf %35 : vector<64x4xf32> to vector<64x4xbf16>
    %c4 = arith.constant 4 : index
    %c0_37 = arith.constant 0 : index
    %c0_38 = arith.constant 0 : index
    %37 = vector.load %arg2[%c4, %c0_37, %c0_38] : memref<9x4x8xbf16, #tpu.memory_space<vmem>>, vector<1x4x8xbf16>
    %38 = vector.shape_cast %37 : vector<1x4x8xbf16> to vector<4x8xbf16>
    %cst_39 = arith.constant dense<0.000000e+00> : vector<64x8xf32>
    %39 = tpu.matmul %36, %38, %cst_39 {dimension_numbers = #tpu.dot_dimension_numbers<[1], [0], [0], [1], [0, 0, 1, 1], [], []>} : vector<64x4xbf16>, vector<4x8xbf16>, vector<64x8xf32> -> vector<64x8xf32>
    %40 = arith.addf %32, %39 : vector<64x8xf32>
    %c0_40 = arith.constant 0 : index
    %c2_41 = arith.constant 2 : index
    %c0_42 = arith.constant 0 : index
    %c1_43 = arith.constant 1 : index
    %c0_44 = arith.constant 0 : index
    %41 = vector.load %arg1[%c0_40, %c2_41, %c0_42, %c1_43, %c0_44] : memref<1x4x9x9x4xf32, #tpu.memory_space<vmem>>, vector<1x1x8x8x4xf32>
    %42 = vector.shape_cast %41 : vector<1x1x8x8x4xf32> to vector<8x8x4xf32>
    %43 = vector.shape_cast %42 : vector<8x8x4xf32> to vector<64x4xf32>
    %44 = arith.truncf %43 : vector<64x4xf32> to vector<64x4xbf16>
    %c5 = arith.constant 5 : index
    %c0_45 = arith.constant 0 : index
    %c0_46 = arith.constant 0 : index
    %45 = vector.load %arg2[%c5, %c0_45, %c0_46] : memref<9x4x8xbf16, #tpu.memory_space<vmem>>, vector<1x4x8xbf16>
    %46 = vector.shape_cast %45 : vector<1x4x8xbf16> to vector<4x8xbf16>
    %cst_47 = arith.constant dense<0.000000e+00> : vector<64x8xf32>
    %47 = tpu.matmul %44, %46, %cst_47 {dimension_numbers = #tpu.dot_dimension_numbers<[1], [0], [0], [1], [0, 0, 1, 1], [], []>} : vector<64x4xbf16>, vector<4x8xbf16>, vector<64x8xf32> -> vector<64x8xf32>
    %48 = arith.addf %40, %47 : vector<64x8xf32>
    %c0_48 = arith.constant 0 : index
    %c0_49 = arith.constant 0 : index
    %c1_50 = arith.constant 1 : index
    %c0_51 = arith.constant 0 : index
    %c0_52 = arith.constant 0 : index
    %49 = vector.load %arg1[%c0_48, %c0_49, %c1_50, %c0_51, %c0_52] : memref<1x4x9x9x4xf32, #tpu.memory_space<vmem>>, vector<1x1x8x8x4xf32>
    %50 = vector.shape_cast %49 : vector<1x1x8x8x4xf32> to vector<8x8x4xf32>
    %51 = vector.shape_cast %50 : vector<8x8x4xf32> to vector<64x4xf32>
    %52 = arith.truncf %51 : vector<64x4xf32> to vector<64x4xbf16>
    %c6 = arith.constant 6 : index
    %c0_53 = arith.constant 0 : index
    %c0_54 = arith.constant 0 : index
    %53 = vector.load %arg2[%c6, %c0_53, %c0_54] : memref<9x4x8xbf16, #tpu.memory_space<vmem>>, vector<1x4x8xbf16>
    %54 = vector.shape_cast %53 : vector<1x4x8xbf16> to vector<4x8xbf16>
    %cst_55 = arith.constant dense<0.000000e+00> : vector<64x8xf32>
    %55 = tpu.matmul %52, %54, %cst_55 {dimension_numbers = #tpu.dot_dimension_numbers<[1], [0], [0], [1], [0, 0, 1, 1], [], []>} : vector<64x4xbf16>, vector<4x8xbf16>, vector<64x8xf32> -> vector<64x8xf32>
    %56 = arith.addf %48, %55 : vector<64x8xf32>
    %c0_56 = arith.constant 0 : index
    %c1_57 = arith.constant 1 : index
    %c1_58 = arith.constant 1 : index
    %c0_59 = arith.constant 0 : index
    %c0_60 = arith.constant 0 : index
    %57 = vector.load %arg1[%c0_56, %c1_57, %c1_58, %c0_59, %c0_60] : memref<1x4x9x9x4xf32, #tpu.memory_space<vmem>>, vector<1x1x8x8x4xf32>
    %58 = vector.shape_cast %57 : vector<1x1x8x8x4xf32> to vector<8x8x4xf32>
    %59 = vector.shape_cast %58 : vector<8x8x4xf32> to vector<64x4xf32>
    %60 = arith.truncf %59 : vector<64x4xf32> to vector<64x4xbf16>
    %c7 = arith.constant 7 : index
    %c0_61 = arith.constant 0 : index
    %c0_62 = arith.constant 0 : index
    %61 = vector.load %arg2[%c7, %c0_61, %c0_62] : memref<9x4x8xbf16, #tpu.memory_space<vmem>>, vector<1x4x8xbf16>
    %62 = vector.shape_cast %61 : vector<1x4x8xbf16> to vector<4x8xbf16>
    %cst_63 = arith.constant dense<0.000000e+00> : vector<64x8xf32>
    %63 = tpu.matmul %60, %62, %cst_63 {dimension_numbers = #tpu.dot_dimension_numbers<[1], [0], [0], [1], [0, 0, 1, 1], [], []>} : vector<64x4xbf16>, vector<4x8xbf16>, vector<64x8xf32> -> vector<64x8xf32>
    %64 = arith.addf %56, %63 : vector<64x8xf32>
    %c0_64 = arith.constant 0 : index
    %c0_65 = arith.constant 0 : index
    %c1_66 = arith.constant 1 : index
    %c1_67 = arith.constant 1 : index
    %c0_68 = arith.constant 0 : index
    %65 = vector.load %arg1[%c0_64, %c0_65, %c1_66, %c1_67, %c0_68] : memref<1x4x9x9x4xf32, #tpu.memory_space<vmem>>, vector<1x1x8x8x4xf32>
    %66 = vector.shape_cast %65 : vector<1x1x8x8x4xf32> to vector<8x8x4xf32>
    %67 = vector.shape_cast %66 : vector<8x8x4xf32> to vector<64x4xf32>
    %68 = arith.truncf %67 : vector<64x4xf32> to vector<64x4xbf16>
    %c8 = arith.constant 8 : index
    %c0_69 = arith.constant 0 : index
    %c0_70 = arith.constant 0 : index
    %69 = vector.load %arg2[%c8, %c0_69, %c0_70] : memref<9x4x8xbf16, #tpu.memory_space<vmem>>, vector<1x4x8xbf16>
    %70 = vector.shape_cast %69 : vector<1x4x8xbf16> to vector<4x8xbf16>
    %cst_71 = arith.constant dense<0.000000e+00> : vector<64x8xf32>
    %71 = tpu.matmul %68, %70, %cst_71 {dimension_numbers = #tpu.dot_dimension_numbers<[1], [0], [0], [1], [0, 0, 1, 1], [], []>} : vector<64x4xbf16>, vector<4x8xbf16>, vector<64x8xf32> -> vector<64x8xf32>
    %72 = arith.addf %64, %71 : vector<64x8xf32>
    %73 = vector.shape_cast %72 : vector<64x8xf32> to vector<8x8x8xf32>
    %74 = arith.truncf %73 : vector<8x8x8xf32> to vector<8x8x8xbf16>
    %c0_72 = arith.constant 0 : index
    %c0_73 = arith.constant 0 : index
    %c0_74 = arith.constant 0 : index
    %c0_75 = arith.constant 0 : index
    %75 = vector.load %arg3[%c0_72, %c0_73, %c0_74, %c0_75] : memref<1x8x8x8xbf16, #tpu.memory_space<vmem>>, vector<1x8x8x8xbf16>
    %76 = vector.shape_cast %75 : vector<1x8x8x8xbf16> to vector<8x8x8xbf16>
    %77 = vector.shape_cast %74 : vector<8x8x8xbf16> to vector<1x8x8x8xbf16>
    tpu.vector_store %arg3[%c0_72, %c0_73, %c0_74, %c0_75], %77 {strides = array<i32>} : memref<1x8x8x8xbf16, #tpu.memory_space<vmem>>, vector<1x8x8x8xbf16>,
    %cst_76 = arith.constant 1.000000e+00 : f32
    %78 = vector.broadcast %cst_76 : f32 to vector<1x64xf32>
    %cst_77 = arith.constant dense<0.000000e+00> : vector<1x8xf32>
    %79 = tpu.matmul %78, %72, %cst_77 {dimension_numbers = #tpu.dot_dimension_numbers<[1], [0], [0], [1], [0, 0, 1, 1], [], []>} : vector<1x64xf32>, vector<64x8xf32>, vector<1x8xf32> -> vector<1x8xf32>
    %c0_78 = arith.constant 0 : index
    %c0_79 = arith.constant 0 : index
    %c0_80 = arith.constant 0 : index
    %80 = vector.load %arg4[%c0_78, %c0_79, %c0_80] : memref<1x2x8xf32, #tpu.memory_space<vmem>>, vector<1x1x8xf32>
    %81 = vector.shape_cast %80 : vector<1x1x8xf32> to vector<1x8xf32>
    %82 = vector.shape_cast %79 : vector<1x8xf32> to vector<1x1x8xf32>
    tpu.vector_store %arg4[%c0_78, %c0_79, %c0_80], %82 {strides = array<i32>} : memref<1x2x8xf32, #tpu.memory_space<vmem>>, vector<1x1x8xf32>,
    %83 = arith.mulf %72, %72 : vector<64x8xf32>
    %cst_81 = arith.constant dense<0.000000e+00> : vector<1x8xf32>
    %84 = tpu.matmul %78, %83, %cst_81 {dimension_numbers = #tpu.dot_dimension_numbers<[1], [0], [0], [1], [0, 0, 1, 1], [], []>} : vector<1x64xf32>, vector<64x8xf32>, vector<1x8xf32> -> vector<1x8xf32>
    %c0_82 = arith.constant 0 : index
    %c1_83 = arith.constant 1 : index
    %c0_84 = arith.constant 0 : index
    %85 = vector.load %arg4[%c0_82, %c1_83, %c0_84] : memref<1x2x8xf32, #tpu.memory_space<vmem>>, vector<1x1x8xf32>
    %86 = vector.shape_cast %85 : vector<1x1x8xf32> to vector<1x8xf32>
    %87 = vector.shape_cast %84 : vector<1x8xf32> to vector<1x1x8xf32>
    tpu.vector_store %arg4[%c0_82, %c1_83, %c0_84], %87 {strides = array<i32>} : memref<1x2x8xf32, #tpu.memory_space<vmem>>, vector<1x1x8xf32>,
    return
  }
  func.func @transform_0(%arg0: i32) -> (i32, i32, i32, i32, i32) {
    %c0_i32 = arith.constant 0 : i32
    %c0_i32_0 = arith.constant 0 : i32
    %c0_i32_1 = arith.constant 0 : i32
    %c0_i32_2 = arith.constant 0 : i32
    %c0_i32_3 = arith.constant 0 : i32
    return %arg0, %c0_i32, %c0_i32_0, %c0_i32_1, %c0_i32_2 : i32, i32, i32, i32, i32
  }
  func.func @transform_1(%arg0: i32) -> (i32, i32, i32) {
    %c0_i32 = arith.constant 0 : i32
    %c0_i32_0 = arith.constant 0 : i32
    %c0_i32_1 = arith.constant 0 : i32
    %c0_i32_2 = arith.constant 0 : i32
    return %c0_i32, %c0_i32_0, %c0_i32_1 : i32, i32, i32
  }
  func.func @transform_2(%arg0: i32) -> (i32, i32, i32, i32) {
    %c0_i32 = arith.constant 0 : i32
    %c0_i32_0 = arith.constant 0 : i32
    %c0_i32_1 = arith.constant 0 : i32
    %c0_i32_2 = arith.constant 0 : i32
    return %arg0, %c0_i32, %c0_i32_0, %c0_i32_1 : i32, i32, i32, i32
  }
  func.func @transform_3(%arg0: i32) -> (i32, i32, i32) {
    %c0_i32 = arith.constant 0 : i32
    %c0_i32_0 = arith.constant 0 : i32
    %c0_i32_1 = arith.constant 0 : i32
    return %arg0, %c0_i32, %c0_i32_0 : i32, i32, i32
  }
}

module attributes {stable_mosaic.version = 11 : i64} {
  func.func @_out_kernel(%arg0: i32, %arg1: memref<1x8x8x8xbf16, #tpu.memory_space<vmem>>, %arg2: memref<1x1x9x9x4xf32, #tpu.memory_space<vmem>>, %arg3: memref<4x8xf32, #tpu.memory_space<vmem>>, %arg4: memref<1x8xf32, #tpu.memory_space<vmem>>, %arg5: memref<1x8xf32, #tpu.memory_space<vmem>>, %arg6: memref<1x8x8x8xf32, #tpu.memory_space<vmem>>) attributes {dimension_semantics = [#tpu.dimension_semantics<parallel>], iteration_bounds = array<i64: 2>, scalar_prefetch = 0 : i64, scratch_operands = 0 : i64, tpu.core_type = #tpu.core_type<tc>, window_params = [{transform_indices = @transform_0, window_bounds = array<i64: 1, 8, 8, 8>}, {transform_indices = @transform_1, window_bounds = array<i64: 1, 1, 9, 9, 4>}, {pipeline_mode = #tpu.pipeline_mode<synchronous>, transform_indices = @transform_2, window_bounds = array<i64: 4, 8>}, {pipeline_mode = #tpu.pipeline_mode<synchronous>, transform_indices = @transform_3, window_bounds = array<i64: 1, 8>}, {pipeline_mode = #tpu.pipeline_mode<synchronous>, transform_indices = @transform_4, window_bounds = array<i64: 1, 8>}, {transform_indices = @transform_5, window_bounds = array<i64: 1, 8, 8, 8>}]} {
    %c0 = arith.constant 0 : index
    %c0_0 = arith.constant 0 : index
    %c0_1 = arith.constant 0 : index
    %c0_2 = arith.constant 0 : index
    %0 = vector.load %arg1[%c0, %c0_0, %c0_1, %c0_2] : memref<1x8x8x8xbf16, #tpu.memory_space<vmem>>, vector<1x8x8x8xbf16>
    %1 = vector.shape_cast %0 : vector<1x8x8x8xbf16> to vector<8x8x8xbf16>
    %2 = arith.extf %1 : vector<8x8x8xbf16> to vector<8x8x8xf32>
    %c0_3 = arith.constant 0 : index
    %c0_4 = arith.constant 0 : index
    %3 = vector.load %arg4[%c0_3, %c0_4] : memref<1x8xf32, #tpu.memory_space<vmem>>, vector<1x8xf32>
    %4 = vector.shape_cast %3 : vector<1x8xf32> to vector<1x1x8xf32>
    %5 = vector.broadcast %4 : vector<1x1x8xf32> to vector<8x8x8xf32>
    %6 = arith.mulf %2, %5 : vector<8x8x8xf32>
    %c0_5 = arith.constant 0 : index
    %c0_6 = arith.constant 0 : index
    %7 = vector.load %arg5[%c0_5, %c0_6] : memref<1x8xf32, #tpu.memory_space<vmem>>, vector<1x8xf32>
    %8 = vector.shape_cast %7 : vector<1x8xf32> to vector<1x1x8xf32>
    %9 = vector.broadcast %8 : vector<1x1x8xf32> to vector<8x8x8xf32>
    %10 = arith.addf %6, %9 : vector<8x8x8xf32>
    %c0_7 = arith.constant 0 : index
    %c0_8 = arith.constant 0 : index
    %c0_9 = arith.constant 0 : index
    %c0_10 = arith.constant 0 : index
    %c0_11 = arith.constant 0 : index
    %11 = vector.load %arg2[%c0_7, %c0_8, %c0_9, %c0_10, %c0_11] : memref<1x1x9x9x4xf32, #tpu.memory_space<vmem>>, vector<1x1x8x8x4xf32>
    %12 = vector.shape_cast %11 : vector<1x1x8x8x4xf32> to vector<8x8x4xf32>
    %c0_12 = arith.constant 0 : index
    %c0_13 = arith.constant 0 : index
    %13 = vector.load %arg3[%c0_12, %c0_13] : memref<4x8xf32, #tpu.memory_space<vmem>>, vector<4x8xf32>
    %14 = vector.extract_strided_slice %12 {offsets = [0, 0, 0], sizes = [8, 8, 1], strides = [1, 1, 1]} : vector<8x8x4xf32> to vector<8x8x1xf32>
    %15 = vector.extract_strided_slice %13 {offsets = [0, 0], sizes = [1, 8], strides = [1, 1]} : vector<4x8xf32> to vector<1x8xf32>
    %16 = vector.shape_cast %15 : vector<1x8xf32> to vector<1x1x8xf32>
    %17 = vector.broadcast %14 : vector<8x8x1xf32> to vector<8x8x8xf32>
    %18 = vector.broadcast %16 : vector<1x1x8xf32> to vector<8x8x8xf32>
    %19 = arith.mulf %17, %18 : vector<8x8x8xf32>
    %20 = arith.addf %10, %19 : vector<8x8x8xf32>
    %21 = vector.extract_strided_slice %12 {offsets = [0, 0, 1], sizes = [8, 8, 1], strides = [1, 1, 1]} : vector<8x8x4xf32> to vector<8x8x1xf32>
    %22 = vector.extract_strided_slice %13 {offsets = [1, 0], sizes = [1, 8], strides = [1, 1]} : vector<4x8xf32> to vector<1x8xf32>
    %23 = vector.shape_cast %22 : vector<1x8xf32> to vector<1x1x8xf32>
    %24 = vector.broadcast %21 : vector<8x8x1xf32> to vector<8x8x8xf32>
    %25 = vector.broadcast %23 : vector<1x1x8xf32> to vector<8x8x8xf32>
    %26 = arith.mulf %24, %25 : vector<8x8x8xf32>
    %27 = arith.addf %20, %26 : vector<8x8x8xf32>
    %28 = vector.extract_strided_slice %12 {offsets = [0, 0, 2], sizes = [8, 8, 1], strides = [1, 1, 1]} : vector<8x8x4xf32> to vector<8x8x1xf32>
    %29 = vector.extract_strided_slice %13 {offsets = [2, 0], sizes = [1, 8], strides = [1, 1]} : vector<4x8xf32> to vector<1x8xf32>
    %30 = vector.shape_cast %29 : vector<1x8xf32> to vector<1x1x8xf32>
    %31 = vector.broadcast %28 : vector<8x8x1xf32> to vector<8x8x8xf32>
    %32 = vector.broadcast %30 : vector<1x1x8xf32> to vector<8x8x8xf32>
    %33 = arith.mulf %31, %32 : vector<8x8x8xf32>
    %34 = arith.addf %27, %33 : vector<8x8x8xf32>
    %35 = vector.extract_strided_slice %12 {offsets = [0, 0, 3], sizes = [8, 8, 1], strides = [1, 1, 1]} : vector<8x8x4xf32> to vector<8x8x1xf32>
    %36 = vector.extract_strided_slice %13 {offsets = [3, 0], sizes = [1, 8], strides = [1, 1]} : vector<4x8xf32> to vector<1x8xf32>
    %37 = vector.shape_cast %36 : vector<1x8xf32> to vector<1x1x8xf32>
    %38 = vector.broadcast %35 : vector<8x8x1xf32> to vector<8x8x8xf32>
    %39 = vector.broadcast %37 : vector<1x1x8xf32> to vector<8x8x8xf32>
    %40 = arith.mulf %38, %39 : vector<8x8x8xf32>
    %41 = arith.addf %34, %40 : vector<8x8x8xf32>
    %cst = arith.constant 0.000000e+00 : f32
    %42 = vector.broadcast %cst : f32 to vector<8x8x8xf32>
    %43 = arith.maximumf %41, %42 : vector<8x8x8xf32>
    %c0_14 = arith.constant 0 : index
    %c0_15 = arith.constant 0 : index
    %c0_16 = arith.constant 0 : index
    %c0_17 = arith.constant 0 : index
    %44 = vector.load %arg6[%c0_14, %c0_15, %c0_16, %c0_17] : memref<1x8x8x8xf32, #tpu.memory_space<vmem>>, vector<1x8x8x8xf32>
    %45 = vector.shape_cast %44 : vector<1x8x8x8xf32> to vector<8x8x8xf32>
    %46 = vector.shape_cast %43 : vector<8x8x8xf32> to vector<1x8x8x8xf32>
    tpu.vector_store %arg6[%c0_14, %c0_15, %c0_16, %c0_17], %46 {strides = array<i32>} : memref<1x8x8x8xf32, #tpu.memory_space<vmem>>, vector<1x8x8x8xf32>,
    return
  }
  func.func @transform_0(%arg0: i32) -> (i32, i32, i32, i32) {
    %c0_i32 = arith.constant 0 : i32
    %c0_i32_0 = arith.constant 0 : i32
    %c0_i32_1 = arith.constant 0 : i32
    %c0_i32_2 = arith.constant 0 : i32
    return %arg0, %c0_i32, %c0_i32_0, %c0_i32_1 : i32, i32, i32, i32
  }
  func.func @transform_1(%arg0: i32) -> (i32, i32, i32, i32, i32) {
    %c3_i32 = arith.constant 3 : i32
    %c0_i32 = arith.constant 0 : i32
    %c0_i32_0 = arith.constant 0 : i32
    %c0_i32_1 = arith.constant 0 : i32
    %c0_i32_2 = arith.constant 0 : i32
    return %arg0, %c3_i32, %c0_i32, %c0_i32_0, %c0_i32_1 : i32, i32, i32, i32, i32
  }
  func.func @transform_2(%arg0: i32) -> (i32, i32) {
    %c0_i32 = arith.constant 0 : i32
    %c0_i32_0 = arith.constant 0 : i32
    %c0_i32_1 = arith.constant 0 : i32
    return %c0_i32, %c0_i32_0 : i32, i32
  }
  func.func @transform_3(%arg0: i32) -> (i32, i32) {
    %c0_i32 = arith.constant 0 : i32
    %c0_i32_0 = arith.constant 0 : i32
    %c0_i32_1 = arith.constant 0 : i32
    return %c0_i32, %c0_i32_0 : i32, i32
  }
  func.func @transform_4(%arg0: i32) -> (i32, i32) {
    %c0_i32 = arith.constant 0 : i32
    %c0_i32_0 = arith.constant 0 : i32
    %c0_i32_1 = arith.constant 0 : i32
    return %c0_i32, %c0_i32_0 : i32, i32
  }
  func.func @transform_5(%arg0: i32) -> (i32, i32, i32, i32) {
    %c0_i32 = arith.constant 0 : i32
    %c0_i32_0 = arith.constant 0 : i32
    %c0_i32_1 = arith.constant 0 : i32
    %c0_i32_2 = arith.constant 0 : i32
    return %arg0, %c0_i32, %c0_i32_0, %c0_i32_1 : i32, i32, i32, i32
  }
}

module attributes {stable_mosaic.version = 11 : i64} {
  func.func @_conv2_kernel(%arg0: i32, %arg1: memref<1x8x8x8xbf16, #tpu.memory_space<vmem>>, %arg2: memref<1x8xf32, #tpu.memory_space<vmem>>, %arg3: memref<1x8xf32, #tpu.memory_space<vmem>>, %arg4: memref<9x8x8xbf16, #tpu.memory_space<vmem>>, %arg5: memref<1x8x8x8xbf16, #tpu.memory_space<vmem>>, %arg6: memref<1x2x8xf32, #tpu.memory_space<vmem>>, %arg7: memref<10x10x8xf32, #tpu.memory_space<vmem>>) attributes {dimension_semantics = [#tpu.dimension_semantics<parallel>], iteration_bounds = array<i64: 2>, scalar_prefetch = 0 : i64, scratch_operands = 1 : i64, tpu.core_type = #tpu.core_type<tc>, window_params = [{transform_indices = @transform_0, window_bounds = array<i64: 1, 8, 8, 8>}, {pipeline_mode = #tpu.pipeline_mode<synchronous>, transform_indices = @transform_1, window_bounds = array<i64: 1, 8>}, {pipeline_mode = #tpu.pipeline_mode<synchronous>, transform_indices = @transform_2, window_bounds = array<i64: 1, 8>}, {pipeline_mode = #tpu.pipeline_mode<synchronous>, transform_indices = @transform_3, window_bounds = array<i64: 9, 8, 8>}, {transform_indices = @transform_4, window_bounds = array<i64: 1, 8, 8, 8>}, {transform_indices = @transform_5, window_bounds = array<i64: 1, 2, 8>}]} {
    %cst = arith.constant 0.000000e+00 : f32
    %0 = vector.broadcast %cst : f32 to vector<10x10x8xf32>
    %c0 = arith.constant 0 : index
    %c0_0 = arith.constant 0 : index
    %c0_1 = arith.constant 0 : index
    %1 = vector.load %arg7[%c0, %c0_0, %c0_1] : memref<10x10x8xf32, #tpu.memory_space<vmem>>, vector<10x10x8xf32>
    tpu.vector_store %arg7[%c0, %c0_0, %c0_1], %0 {strides = array<i32>} : memref<10x10x8xf32, #tpu.memory_space<vmem>>, vector<10x10x8xf32>,
    %c0_2 = arith.constant 0 : index
    %c0_3 = arith.constant 0 : index
    %c0_4 = arith.constant 0 : index
    %c0_5 = arith.constant 0 : index
    %2 = vector.load %arg1[%c0_2, %c0_3, %c0_4, %c0_5] : memref<1x8x8x8xbf16, #tpu.memory_space<vmem>>, vector<1x8x8x8xbf16>
    %3 = vector.shape_cast %2 : vector<1x8x8x8xbf16> to vector<8x8x8xbf16>
    %4 = arith.extf %3 : vector<8x8x8xbf16> to vector<8x8x8xf32>
    %c0_6 = arith.constant 0 : index
    %c0_7 = arith.constant 0 : index
    %5 = vector.load %arg2[%c0_6, %c0_7] : memref<1x8xf32, #tpu.memory_space<vmem>>, vector<1x8xf32>
    %6 = vector.shape_cast %5 : vector<1x8xf32> to vector<1x1x8xf32>
    %7 = vector.broadcast %6 : vector<1x1x8xf32> to vector<8x8x8xf32>
    %8 = arith.mulf %4, %7 : vector<8x8x8xf32>
    %c0_8 = arith.constant 0 : index
    %c0_9 = arith.constant 0 : index
    %9 = vector.load %arg3[%c0_8, %c0_9] : memref<1x8xf32, #tpu.memory_space<vmem>>, vector<1x8xf32>
    %10 = vector.shape_cast %9 : vector<1x8xf32> to vector<1x1x8xf32>
    %11 = vector.broadcast %10 : vector<1x1x8xf32> to vector<8x8x8xf32>
    %12 = arith.addf %8, %11 : vector<8x8x8xf32>
    %cst_10 = arith.constant 0.000000e+00 : f32
    %13 = vector.broadcast %cst_10 : f32 to vector<8x8x8xf32>
    %14 = arith.maximumf %12, %13 : vector<8x8x8xf32>
    %c1 = arith.constant 1 : index
    %c1_11 = arith.constant 1 : index
    %c0_12 = arith.constant 0 : index
    %15 = vector.load %arg7[%c1, %c1_11, %c0_12] : memref<10x10x8xf32, #tpu.memory_space<vmem>>, vector<8x8x8xf32>
    tpu.vector_store %arg7[%c1, %c1_11, %c0_12], %14 {strides = array<i32>} : memref<10x10x8xf32, #tpu.memory_space<vmem>>, vector<8x8x8xf32>,
    %cst_13 = arith.constant 0.000000e+00 : f32
    %16 = vector.broadcast %cst_13 : f32 to vector<64x8xf32>
    %c0_14 = arith.constant 0 : index
    %c0_15 = arith.constant 0 : index
    %c0_16 = arith.constant 0 : index
    %17 = vector.load %arg7[%c0_14, %c0_15, %c0_16] : memref<10x10x8xf32, #tpu.memory_space<vmem>>, vector<8x8x8xf32>
    %18 = vector.shape_cast %17 : vector<8x8x8xf32> to vector<64x8xf32>
    %19 = arith.truncf %18 : vector<64x8xf32> to vector<64x8xbf16>
    %c0_17 = arith.constant 0 : index
    %c0_18 = arith.constant 0 : index
    %c0_19 = arith.constant 0 : index
    %20 = vector.load %arg4[%c0_17, %c0_18, %c0_19] : memref<9x8x8xbf16, #tpu.memory_space<vmem>>, vector<1x8x8xbf16>
    %21 = vector.shape_cast %20 : vector<1x8x8xbf16> to vector<8x8xbf16>
    %cst_20 = arith.constant dense<0.000000e+00> : vector<64x8xf32>
    %22 = tpu.matmul %19, %21, %cst_20 {dimension_numbers = #tpu.dot_dimension_numbers<[1], [0], [0], [1], [0, 0, 1, 1], [], []>} : vector<64x8xbf16>, vector<8x8xbf16>, vector<64x8xf32> -> vector<64x8xf32>
    %23 = arith.addf %16, %22 : vector<64x8xf32>
    %c0_21 = arith.constant 0 : index
    %c1_22 = arith.constant 1 : index
    %c0_23 = arith.constant 0 : index
    %24 = vector.load %arg7[%c0_21, %c1_22, %c0_23] : memref<10x10x8xf32, #tpu.memory_space<vmem>>, vector<8x8x8xf32>
    %25 = vector.shape_cast %24 : vector<8x8x8xf32> to vector<64x8xf32>
    %26 = arith.truncf %25 : vector<64x8xf32> to vector<64x8xbf16>
    %c1_24 = arith.constant 1 : index
    %c0_25 = arith.constant 0 : index
    %c0_26 = arith.constant 0 : index
    %27 = vector.load %arg4[%c1_24, %c0_25, %c0_26] : memref<9x8x8xbf16, #tpu.memory_space<vmem>>, vector<1x8x8xbf16>
    %28 = vector.shape_cast %27 : vector<1x8x8xbf16> to vector<8x8xbf16>
    %cst_27 = arith.constant dense<0.000000e+00> : vector<64x8xf32>
    %29 = tpu.matmul %26, %28, %cst_27 {dimension_numbers = #tpu.dot_dimension_numbers<[1], [0], [0], [1], [0, 0, 1, 1], [], []>} : vector<64x8xbf16>, vector<8x8xbf16>, vector<64x8xf32> -> vector<64x8xf32>
    %30 = arith.addf %23, %29 : vector<64x8xf32>
    %c0_28 = arith.constant 0 : index
    %c2 = arith.constant 2 : index
    %c0_29 = arith.constant 0 : index
    %31 = vector.load %arg7[%c0_28, %c2, %c0_29] : memref<10x10x8xf32, #tpu.memory_space<vmem>>, vector<8x8x8xf32>
    %32 = vector.shape_cast %31 : vector<8x8x8xf32> to vector<64x8xf32>
    %33 = arith.truncf %32 : vector<64x8xf32> to vector<64x8xbf16>
    %c2_30 = arith.constant 2 : index
    %c0_31 = arith.constant 0 : index
    %c0_32 = arith.constant 0 : index
    %34 = vector.load %arg4[%c2_30, %c0_31, %c0_32] : memref<9x8x8xbf16, #tpu.memory_space<vmem>>, vector<1x8x8xbf16>
    %35 = vector.shape_cast %34 : vector<1x8x8xbf16> to vector<8x8xbf16>
    %cst_33 = arith.constant dense<0.000000e+00> : vector<64x8xf32>
    %36 = tpu.matmul %33, %35, %cst_33 {dimension_numbers = #tpu.dot_dimension_numbers<[1], [0], [0], [1], [0, 0, 1, 1], [], []>} : vector<64x8xbf16>, vector<8x8xbf16>, vector<64x8xf32> -> vector<64x8xf32>
    %37 = arith.addf %30, %36 : vector<64x8xf32>
    %c1_34 = arith.constant 1 : index
    %c0_35 = arith.constant 0 : index
    %c0_36 = arith.constant 0 : index
    %38 = vector.load %arg7[%c1_34, %c0_35, %c0_36] : memref<10x10x8xf32, #tpu.memory_space<vmem>>, vector<8x8x8xf32>
    %39 = vector.shape_cast %38 : vector<8x8x8xf32> to vector<64x8xf32>
    %40 = arith.truncf %39 : vector<64x8xf32> to vector<64x8xbf16>
    %c3 = arith.constant 3 : index
    %c0_37 = arith.constant 0 : index
    %c0_38 = arith.constant 0 : index
    %41 = vector.load %arg4[%c3, %c0_37, %c0_38] : memref<9x8x8xbf16, #tpu.memory_space<vmem>>, vector<1x8x8xbf16>
    %42 = vector.shape_cast %41 : vector<1x8x8xbf16> to vector<8x8xbf16>
    %cst_39 = arith.constant dense<0.000000e+00> : vector<64x8xf32>
    %43 = tpu.matmul %40, %42, %cst_39 {dimension_numbers = #tpu.dot_dimension_numbers<[1], [0], [0], [1], [0, 0, 1, 1], [], []>} : vector<64x8xbf16>, vector<8x8xbf16>, vector<64x8xf32> -> vector<64x8xf32>
    %44 = arith.addf %37, %43 : vector<64x8xf32>
    %c1_40 = arith.constant 1 : index
    %c1_41 = arith.constant 1 : index
    %c0_42 = arith.constant 0 : index
    %45 = vector.load %arg7[%c1_40, %c1_41, %c0_42] : memref<10x10x8xf32, #tpu.memory_space<vmem>>, vector<8x8x8xf32>
    %46 = vector.shape_cast %45 : vector<8x8x8xf32> to vector<64x8xf32>
    %47 = arith.truncf %46 : vector<64x8xf32> to vector<64x8xbf16>
    %c4 = arith.constant 4 : index
    %c0_43 = arith.constant 0 : index
    %c0_44 = arith.constant 0 : index
    %48 = vector.load %arg4[%c4, %c0_43, %c0_44] : memref<9x8x8xbf16, #tpu.memory_space<vmem>>, vector<1x8x8xbf16>
    %49 = vector.shape_cast %48 : vector<1x8x8xbf16> to vector<8x8xbf16>
    %cst_45 = arith.constant dense<0.000000e+00> : vector<64x8xf32>
    %50 = tpu.matmul %47, %49, %cst_45 {dimension_numbers = #tpu.dot_dimension_numbers<[1], [0], [0], [1], [0, 0, 1, 1], [], []>} : vector<64x8xbf16>, vector<8x8xbf16>, vector<64x8xf32> -> vector<64x8xf32>
    %51 = arith.addf %44, %50 : vector<64x8xf32>
    %c1_46 = arith.constant 1 : index
    %c2_47 = arith.constant 2 : index
    %c0_48 = arith.constant 0 : index
    %52 = vector.load %arg7[%c1_46, %c2_47, %c0_48] : memref<10x10x8xf32, #tpu.memory_space<vmem>>, vector<8x8x8xf32>
    %53 = vector.shape_cast %52 : vector<8x8x8xf32> to vector<64x8xf32>
    %54 = arith.truncf %53 : vector<64x8xf32> to vector<64x8xbf16>
    %c5 = arith.constant 5 : index
    %c0_49 = arith.constant 0 : index
    %c0_50 = arith.constant 0 : index
    %55 = vector.load %arg4[%c5, %c0_49, %c0_50] : memref<9x8x8xbf16, #tpu.memory_space<vmem>>, vector<1x8x8xbf16>
    %56 = vector.shape_cast %55 : vector<1x8x8xbf16> to vector<8x8xbf16>
    %cst_51 = arith.constant dense<0.000000e+00> : vector<64x8xf32>
    %57 = tpu.matmul %54, %56, %cst_51 {dimension_numbers = #tpu.dot_dimension_numbers<[1], [0], [0], [1], [0, 0, 1, 1], [], []>} : vector<64x8xbf16>, vector<8x8xbf16>, vector<64x8xf32> -> vector<64x8xf32>
    %58 = arith.addf %51, %57 : vector<64x8xf32>
    %c2_52 = arith.constant 2 : index
    %c0_53 = arith.constant 0 : index
    %c0_54 = arith.constant 0 : index
    %59 = vector.load %arg7[%c2_52, %c0_53, %c0_54] : memref<10x10x8xf32, #tpu.memory_space<vmem>>, vector<8x8x8xf32>
    %60 = vector.shape_cast %59 : vector<8x8x8xf32> to vector<64x8xf32>
    %61 = arith.truncf %60 : vector<64x8xf32> to vector<64x8xbf16>
    %c6 = arith.constant 6 : index
    %c0_55 = arith.constant 0 : index
    %c0_56 = arith.constant 0 : index
    %62 = vector.load %arg4[%c6, %c0_55, %c0_56] : memref<9x8x8xbf16, #tpu.memory_space<vmem>>, vector<1x8x8xbf16>
    %63 = vector.shape_cast %62 : vector<1x8x8xbf16> to vector<8x8xbf16>
    %cst_57 = arith.constant dense<0.000000e+00> : vector<64x8xf32>
    %64 = tpu.matmul %61, %63, %cst_57 {dimension_numbers = #tpu.dot_dimension_numbers<[1], [0], [0], [1], [0, 0, 1, 1], [], []>} : vector<64x8xbf16>, vector<8x8xbf16>, vector<64x8xf32> -> vector<64x8xf32>
    %65 = arith.addf %58, %64 : vector<64x8xf32>
    %c2_58 = arith.constant 2 : index
    %c1_59 = arith.constant 1 : index
    %c0_60 = arith.constant 0 : index
    %66 = vector.load %arg7[%c2_58, %c1_59, %c0_60] : memref<10x10x8xf32, #tpu.memory_space<vmem>>, vector<8x8x8xf32>
    %67 = vector.shape_cast %66 : vector<8x8x8xf32> to vector<64x8xf32>
    %68 = arith.truncf %67 : vector<64x8xf32> to vector<64x8xbf16>
    %c7 = arith.constant 7 : index
    %c0_61 = arith.constant 0 : index
    %c0_62 = arith.constant 0 : index
    %69 = vector.load %arg4[%c7, %c0_61, %c0_62] : memref<9x8x8xbf16, #tpu.memory_space<vmem>>, vector<1x8x8xbf16>
    %70 = vector.shape_cast %69 : vector<1x8x8xbf16> to vector<8x8xbf16>
    %cst_63 = arith.constant dense<0.000000e+00> : vector<64x8xf32>
    %71 = tpu.matmul %68, %70, %cst_63 {dimension_numbers = #tpu.dot_dimension_numbers<[1], [0], [0], [1], [0, 0, 1, 1], [], []>} : vector<64x8xbf16>, vector<8x8xbf16>, vector<64x8xf32> -> vector<64x8xf32>
    %72 = arith.addf %65, %71 : vector<64x8xf32>
    %c2_64 = arith.constant 2 : index
    %c2_65 = arith.constant 2 : index
    %c0_66 = arith.constant 0 : index
    %73 = vector.load %arg7[%c2_64, %c2_65, %c0_66] : memref<10x10x8xf32, #tpu.memory_space<vmem>>, vector<8x8x8xf32>
    %74 = vector.shape_cast %73 : vector<8x8x8xf32> to vector<64x8xf32>
    %75 = arith.truncf %74 : vector<64x8xf32> to vector<64x8xbf16>
    %c8 = arith.constant 8 : index
    %c0_67 = arith.constant 0 : index
    %c0_68 = arith.constant 0 : index
    %76 = vector.load %arg4[%c8, %c0_67, %c0_68] : memref<9x8x8xbf16, #tpu.memory_space<vmem>>, vector<1x8x8xbf16>
    %77 = vector.shape_cast %76 : vector<1x8x8xbf16> to vector<8x8xbf16>
    %cst_69 = arith.constant dense<0.000000e+00> : vector<64x8xf32>
    %78 = tpu.matmul %75, %77, %cst_69 {dimension_numbers = #tpu.dot_dimension_numbers<[1], [0], [0], [1], [0, 0, 1, 1], [], []>} : vector<64x8xbf16>, vector<8x8xbf16>, vector<64x8xf32> -> vector<64x8xf32>
    %79 = arith.addf %72, %78 : vector<64x8xf32>
    %80 = vector.shape_cast %79 : vector<64x8xf32> to vector<8x8x8xf32>
    %81 = arith.truncf %80 : vector<8x8x8xf32> to vector<8x8x8xbf16>
    %c0_70 = arith.constant 0 : index
    %c0_71 = arith.constant 0 : index
    %c0_72 = arith.constant 0 : index
    %c0_73 = arith.constant 0 : index
    %82 = vector.load %arg5[%c0_70, %c0_71, %c0_72, %c0_73] : memref<1x8x8x8xbf16, #tpu.memory_space<vmem>>, vector<1x8x8x8xbf16>
    %83 = vector.shape_cast %82 : vector<1x8x8x8xbf16> to vector<8x8x8xbf16>
    %84 = vector.shape_cast %81 : vector<8x8x8xbf16> to vector<1x8x8x8xbf16>
    tpu.vector_store %arg5[%c0_70, %c0_71, %c0_72, %c0_73], %84 {strides = array<i32>} : memref<1x8x8x8xbf16, #tpu.memory_space<vmem>>, vector<1x8x8x8xbf16>,
    %cst_74 = arith.constant 1.000000e+00 : f32
    %85 = vector.broadcast %cst_74 : f32 to vector<1x64xf32>
    %cst_75 = arith.constant dense<0.000000e+00> : vector<1x8xf32>
    %86 = tpu.matmul %85, %79, %cst_75 {dimension_numbers = #tpu.dot_dimension_numbers<[1], [0], [0], [1], [0, 0, 1, 1], [], []>} : vector<1x64xf32>, vector<64x8xf32>, vector<1x8xf32> -> vector<1x8xf32>
    %c0_76 = arith.constant 0 : index
    %c0_77 = arith.constant 0 : index
    %c0_78 = arith.constant 0 : index
    %87 = vector.load %arg6[%c0_76, %c0_77, %c0_78] : memref<1x2x8xf32, #tpu.memory_space<vmem>>, vector<1x1x8xf32>
    %88 = vector.shape_cast %87 : vector<1x1x8xf32> to vector<1x8xf32>
    %89 = vector.shape_cast %86 : vector<1x8xf32> to vector<1x1x8xf32>
    tpu.vector_store %arg6[%c0_76, %c0_77, %c0_78], %89 {strides = array<i32>} : memref<1x2x8xf32, #tpu.memory_space<vmem>>, vector<1x1x8xf32>,
    %90 = arith.mulf %79, %79 : vector<64x8xf32>
    %cst_79 = arith.constant dense<0.000000e+00> : vector<1x8xf32>
    %91 = tpu.matmul %85, %90, %cst_79 {dimension_numbers = #tpu.dot_dimension_numbers<[1], [0], [0], [1], [0, 0, 1, 1], [], []>} : vector<1x64xf32>, vector<64x8xf32>, vector<1x8xf32> -> vector<1x8xf32>
    %c0_80 = arith.constant 0 : index
    %c1_81 = arith.constant 1 : index
    %c0_82 = arith.constant 0 : index
    %92 = vector.load %arg6[%c0_80, %c1_81, %c0_82] : memref<1x2x8xf32, #tpu.memory_space<vmem>>, vector<1x1x8xf32>
    %93 = vector.shape_cast %92 : vector<1x1x8xf32> to vector<1x8xf32>
    %94 = vector.shape_cast %91 : vector<1x8xf32> to vector<1x1x8xf32>
    tpu.vector_store %arg6[%c0_80, %c1_81, %c0_82], %94 {strides = array<i32>} : memref<1x2x8xf32, #tpu.memory_space<vmem>>, vector<1x1x8xf32>,
    return
  }
  func.func @transform_0(%arg0: i32) -> (i32, i32, i32, i32) {
    %c0_i32 = arith.constant 0 : i32
    %c0_i32_0 = arith.constant 0 : i32
    %c0_i32_1 = arith.constant 0 : i32
    %c0_i32_2 = arith.constant 0 : i32
    return %arg0, %c0_i32, %c0_i32_0, %c0_i32_1 : i32, i32, i32, i32
  }
  func.func @transform_1(%arg0: i32) -> (i32, i32) {
    %c0_i32 = arith.constant 0 : i32
    %c0_i32_0 = arith.constant 0 : i32
    %c0_i32_1 = arith.constant 0 : i32
    return %c0_i32, %c0_i32_0 : i32, i32
  }
  func.func @transform_2(%arg0: i32) -> (i32, i32) {
    %c0_i32 = arith.constant 0 : i32
    %c0_i32_0 = arith.constant 0 : i32
    %c0_i32_1 = arith.constant 0 : i32
    return %c0_i32, %c0_i32_0 : i32, i32
  }
  func.func @transform_3(%arg0: i32) -> (i32, i32, i32) {
    %c0_i32 = arith.constant 0 : i32
    %c0_i32_0 = arith.constant 0 : i32
    %c0_i32_1 = arith.constant 0 : i32
    %c0_i32_2 = arith.constant 0 : i32
    return %c0_i32, %c0_i32_0, %c0_i32_1 : i32, i32, i32
  }
  func.func @transform_4(%arg0: i32) -> (i32, i32, i32, i32) {
    %c0_i32 = arith.constant 0 : i32
    %c0_i32_0 = arith.constant 0 : i32
    %c0_i32_1 = arith.constant 0 : i32
    %c0_i32_2 = arith.constant 0 : i32
    return %arg0, %c0_i32, %c0_i32_0, %c0_i32_1 : i32, i32, i32, i32
  }
  func.func @transform_5(%arg0: i32) -> (i32, i32, i32) {
    %c0_i32 = arith.constant 0 : i32
    %c0_i32_0 = arith.constant 0 : i32
    %c0_i32_1 = arith.constant 0 : i32
    return %arg0, %c0_i32, %c0_i32_0 : i32, i32, i32
  }
}

</mosaic_0001>

<bundles_post_ra>
// kernel: conv_res_block_forward.5
= control target key start
LH: loop header
LB: loop body
LE: loop exit
PB: predicated region body
PF: predicated region fallthrough
CT: control target
= control target key end

     0   :  { %s700_s18 = smov 0   ;;  %s846_s0 = inlined_call_operand.vmem [shape: bf16[2,8,8,8], index: 0, kind: input, shape index: {}]   ;;  %s847_s1 = inlined_call_operand.vmem [shape: f32[2,4,9,9,4], index: 1, kind: input, shape index: {}]   ;;  %s848_s2 = inlined_call_operand.vmem [shape: f32[4,8], index: 2, kind: input, shape index: {}]   ;;  %s849_s3 = inlined_call_operand.vmem [shape: f32[1,8], index: 3, kind: input, shape index: {}]   ;;  %s850_s4 = inlined_call_operand.vmem [shape: f32[1,8], index: 4, kind: input, shape index: {}]   ;;  %s851_s5 = inlined_call_operand.vmem [shape: f32[2,8,8,8], index: 5, kind: output, shape index: {}]  }
   0x1 LB: > { %s591_s19 = sadd.s32 4294967295, %s664_s18   ;;  %p595_p0 = scmp.ge.s32.totalorder %s664_s18, 1  ;;  %s664_s18 = sphi %s700_s18, %s15_s18  }
   0x2   : > { %p198_p1 = scmp.lt.s32.totalorder %s664_s18, 3 }
   0x4   : > { %p199_p2 = pnand %p595_p0, %p198_p1 }
   0x5   : > { %p232_p3 = scmp.lt.s32.totalorder (!%p199_p2), %s591_s19, 1 }
   0x6   : > { %202 = sbr.rel (%p199_p2) target bundleno = 230 (0xe6), region = 40 }
   0xb   : > { %v666_v0 = vmov 0   ;;  %s853_s19 = smov (!%p232_p3, %s591_s19), 1  ;;  %v667_v9 = vmov 1   ;;  %v668_v10 = vmov 2   ;;  %v669_v11 = vmov 3  }
   0xc   : > { %646 = vset.pattern.permute.xlu2 %v666_v0  ;;  %645 = vset.pattern.permute.xlu1 %v666_v0  ;;  %s598_s20 = smul.u32 576, %s853_s19  ;;  %s611_s24 = sshll.u32 %s853_s19, 5  ;;  %v724_v14 = vld [vmem:[%s849_s3] ss:$0 sm:$0xff]  ;;  %vm509_vm0 = vcmask 64512  }
   0xd   : > { %644 = vset.pattern.permute.xlu0 %v666_v0  ;;  %s718_s27 = scalar_lea.vmem %s846_s0, %s611_s24  ;;  %v296_v16 = vld [vmem:[%s848_s2] sm:$0xf]  ;;  %s612_s9 = sshll.u32 %s853_s19, 6 }
   0xe   : > { %s557_s23 = scalar_lea.vmem %s847_s1, %s598_s20  ;;  %v630_v12 = vld [vmem:[%s718_s27 + $0x10] sm:$0xff]   ;;  %v733_v17 = vld [vmem:[%s850_s4] ss:$0 sm:$0xff]  ;;  %v735_v18 = vperm.slane %v296_v16, 0  ;;  %v629_v29 = vld [vmem:[%s718_s27 + $0x8] sm:$0xff]   ;;  %v771_v61 = vperm.slane %v296_v16, 1  ;;  %s791_s12 = scalar_lea.vmem %s851_s5, %s612_s9 }
   0xf   : > { %v605_v1 = vld [vmem:[%s557_s23 + $0x1f0] sm:$0xff]  ;;  %v606_v4 = vld [vmem:[%s557_s23 + $0x200] sm:$0xff]  ;;  %v623_v13 = vunpack.c.l.bf16 %v630_v12  ;;  %v624_v20 = vunpack.c.h.bf16 %v630_v12  ;;  %v619_v30 = vunpack.c.l.bf16 %v629_v29  ;;  %v753_v39 = vld [vmem:[%s718_s27 + $0x18] sm:$0xff]   ;;  %v620_v62 = vunpack.c.h.bf16 %v629_v29 }
  0x10   : > { %v603_v2 = vld [vmem:[%s557_s23 + $0x1d0] sm:$0xff]  ;;  %319 = vperm.xlu2 %646, %v605_v1   ;;  %v604_v5 = vld [vmem:[%s557_s23 + $0x1e0] sm:$0xff]  ;;  %v628_v40 = vunpack.c.h.bf16 %v753_v39 }
  0x11   : > { %v601_v3 = vld [vmem:[%s557_s23 + $0x1b0] sm:$0xff]  ;;  %309 = vperm.xlu1 %645, %v603_v2   ;;  %v602_v6 = vld [vmem:[%s557_s23 + $0x1c0] sm:$0xff]  ;;  %v272_v15 = vmul.f32 %v724_v14, %v623_v13  ;;  %v273_v24 = vmul.f32 %v724_v14, %v624_v20  ;;  %v270_v32 = vmul.f32 %v724_v14, %v619_v30 }
  0x12   : > { %299 = vperm.xlu0 %644, %v601_v3   ;;  %v608_v7 = vld [vmem:[%s557_s23 + $0x220] sm:$0xff]  ;;  %v607_v8 = vld [vmem:[%s557_s23 + $0x210] sm:$0xff]  ;;  %v275_v44 = vmul.f32 %v724_v14, %v628_v40 }
  0x13   : > { %v284_v19 = vadd.f32 %v733_v17, %v272_v15  ;;  %v285_v25 = vadd.f32 %v733_v17, %v273_v24  ;;  %v282_v33 = vadd.f32 %v733_v17, %v270_v32  ;;  %v614_v51 = vld [vmem:[%s718_s27] sm:$0xff]  }
  0x14   : > { %v287_v45 = vadd.f32 %v733_v17, %v275_v44  ;;  %v615_v52 = vunpack.c.l.bf16 %v614_v51 }
  0x16   : > { %v268_v56 = vmul.f32 %v724_v14, %v615_v52 }
  0x18   : > { %324 = vperm.xlu2 %646, %v606_v4   ;;  %v280_v57 = vadd.f32 %v733_v17, %v268_v56 }
  0x19   : > { %314 = vperm.xlu1 %645, %v604_v5  }
  0x1a   : > { %304 = vperm.xlu0 %644, %v602_v6  }
  0x20   : > { %647 = vset.pattern.permute.xlu2 %v667_v9 }
  0x21   : > { %334 = vperm.xlu1 %645, %v608_v7   ;;  %355 = vperm.xlu2 %647, %v601_v3  }
  0x22   : > { %329 = vperm.xlu0 %644, %v607_v8  }
  0x29   : > { %649 = vset.pattern.permute.xlu1 %v667_v9  ;;  %367 = vperm.xlu2 %647, %v604_v5  }
  0x2a   : > { %648 = vset.pattern.permute.xlu0 %v667_v9  ;;  %363 = vperm.xlu1 %649, %v603_v2  }
  0x2b   : > { %359 = vperm.xlu0 %648, %v602_v6  }
  0x31   : > { %375 = vperm.xlu2 %647, %v606_v4  }
  0x32   : > { %371 = vperm.xlu1 %649, %v605_v1  }
  0x33   : > { %379 = vperm.xlu0 %648, %v607_v8  }
  0x39   : > { %650 = vset.pattern.permute.xlu2 %v668_v10 }
  0x3a   : > { %383 = vperm.xlu1 %649, %v608_v7   ;;  %404 = vperm.xlu2 %650, %v601_v3  }
  0x3b   : > { %651 = vset.pattern.permute.xlu0 %v668_v10 }
  0x3c   : > { %408 = vperm.xlu0 %651, %v602_v6  }
  0x42   : > { %652 = vset.pattern.permute.xlu1 %v668_v10  ;;  %416 = vperm.xlu2 %650, %v604_v5   ;;  %v616_v10 = vunpack.c.h.bf16 %v614_v51 }
  0x43   : > { %412 = vperm.xlu1 %652, %v603_v2  }
  0x44   : > { %428 = vperm.xlu0 %651, %v607_v8  }
  0x4a   : > { %424 = vperm.xlu2 %650, %v606_v4  }
  0x4b   : > { %420 = vperm.xlu1 %652, %v605_v1  }
  0x4c   : > { %654 = vset.pattern.permute.xlu0 %v669_v11 }
  0x4d   : > { %457 = vperm.xlu0 %654, %v602_v6  }
  0x52   : > { %653 = vset.pattern.permute.xlu2 %v669_v11 }
  0x53   : > { %432 = vperm.xlu1 %652, %v608_v7   ;;  %453 = vperm.xlu2 %653, %v601_v3   ;;  %v271_v3 = vmul.f32 %v724_v14, %v620_v62 }
  0x55   : > { %477 = vperm.xlu0 %654, %v607_v8   ;;  %v283_v8 = vadd.f32 %v733_v17, %v271_v3 }
  0x5b   : > { %655 = vset.pattern.permute.xlu1 %v669_v11  ;;  %465 = vperm.xlu2 %653, %v604_v5  }
  0x5c   : > { %461 = vperm.xlu1 %655, %v603_v2   ;;  %v774_v2 = vperm.slane %v296_v16, 2 }
  0x63   : > { %473 = vperm.xlu2 %653, %v606_v4  }
  0x64   : > { %469 = vperm.xlu1 %655, %v605_v1  }
  0x6a   : > { %v320_v21 = vpop.permute.xlu2 %319 }
  0x6b   : > { %v342_v22 = vmul.f32 %v735_v18, %v320_v21  ;;  %v269_v21 = vmul.f32 %v724_v14, %v616_v10 }
  0x6c   : > { %481 = vperm.xlu1 %655, %v608_v7   ;;  %v780_v7 = vperm.slane %v296_v16, 3 }
  0x6d   : > { %v739_v23 = vadd.f32 %v342_v22, %v284_v19 }
  0x72   : > { %v325_v26 = vpop.permute.xlu2 %324 }
  0x73   : > { %v343_v27 = vmul.f32 %v735_v18, %v325_v26  ;;  %v281_v26 = vadd.f32 %v733_v17, %v269_v21 }
  0x75   : > { %v744_v28 = vadd.f32 %v343_v27, %v285_v25 }
  0x7b   : > { %v356_v31 = vpop.permute.xlu2 %355 }
  0x7c   : > { %v387_v0 = vmul.f32 %v771_v61, %v356_v31  ;;  %v627_v31 = vunpack.c.l.bf16 %v753_v39 }
  0x83   : > { %v310_v34 = vpop.permute.xlu1 %309  ;;  %v368_v37 = vpop.permute.xlu2 %367 }
  0x84   : > { %v340_v35 = vmul.f32 %v735_v18, %v310_v34  ;;  %v300_v36 = vpop.permute.xlu0 %299  ;;  %v390_v19 = vmul.f32 %v771_v61, %v368_v37 }
  0x85   : > { %v338_v58 = vmul.f32 %v735_v18, %v300_v36 }
  0x86   : > { %v750_v38 = vadd.f32 %v340_v35, %v282_v33 }
  0x87   : > { %v346_v1 = vadd.f32 %v338_v58, %v280_v57 }
  0x89   : > { %v395_v4 = vadd.f32 %v387_v0, %v346_v1 }
  0x8b   : > { %v315_v41 = vpop.permute.xlu1 %314  ;;  %v376_v43 = vpop.permute.xlu2 %375 }
  0x8c   : > { %v305_v42 = vpop.permute.xlu0 %304  ;;  %v341_v9 = vmul.f32 %v735_v18, %v315_v41  ;;  %v392_v36 = vmul.f32 %v771_v61, %v376_v43  ;;  %v274_v41 = vmul.f32 %v724_v14, %v627_v31 }
  0x8d   : > { %v339_v27 = vmul.f32 %v735_v18, %v305_v42 }
  0x8e   : > { %v349_v20 = vadd.f32 %v341_v9, %v283_v8  ;;  %v400_v39 = vadd.f32 %v392_v36, %v744_v28 }
  0x8f   : > { %v347_v35 = vadd.f32 %v339_v27, %v281_v26 }
  0x90   : > { %v398_v29 = vadd.f32 %v390_v19, %v349_v20 }
  0x93   : > { %v335_v46 = vpop.permute.xlu1 %334 }
  0x94   : > { %v345_v47 = vmul.f32 %v735_v18, %v335_v46  ;;  %v759_v48 = vpop.permute.xlu0 %329  ;;  %v405_v50 = vpop.permute.xlu2 %404 }
  0x95   : > { %v436_v5 = vmul.f32 %v774_v2, %v405_v50  ;;  %v286_v50 = vadd.f32 %v733_v17, %v274_v41  ;;  %v344_v43 = vmul.f32 %v735_v18, %v759_v48 }
  0x96   : > { %v761_v49 = vadd.f32 %v345_v47, %v287_v45 }
  0x97   : > { %v444_v13 = vadd.f32 %v436_v5, %v395_v4  ;;  %v352_v62 = vadd.f32 %v344_v43, %v286_v50 }
  0x9c   : > { %v764_v53 = vpop.permute.xlu1 %363  ;;  %v417_v55 = vpop.permute.xlu2 %416 }
  0x9d   : > { %v360_v54 = vpop.permute.xlu0 %359  ;;  %v439_v16 = vmul.f32 %v774_v2, %v417_v55 }
  0x9e   : > { %v388_v37 = vmul.f32 %v771_v61, %v360_v54 }
  0x9f   : > { %v447_v33 = vadd.f32 %v439_v16, %v398_v29 }
  0xa0   : > { %v396_v47 = vadd.f32 %v388_v37, %v347_v35 }
  0xa4   : > { %v769_v59 = vpop.permute.xlu1 %371  ;;  %v425_v63 = vpop.permute.xlu2 %424 }
  0xa5   : > { %v380_v60 = vpop.permute.xlu0 %379  ;;  %v441_v42 = vmul.f32 %v774_v2, %v425_v63 }
  0xa6   : > { %v393_v28 = vmul.f32 %v771_v61, %v380_v60  ;;  %v389_v60 = vmul.f32 %v771_v61, %v764_v53 }
  0xa7   : > { %v449_v52 = vadd.f32 %v441_v42, %v400_v39 }
  0xa8   : > { %v401_v0 = vadd.f32 %v393_v28, %v352_v62  ;;  %v397_v10 = vadd.f32 %v389_v60, %v750_v38 }
  0xac   : > { %v778_v6 = vpop.permute.xlu1 %383 }
  0xad   : > { %v454_v12 = vpop.permute.xlu2 %453 }
  0xae   : > { %v409_v11 = vpop.permute.xlu0 %408  ;;  %v485_v15 = vmul.f32 %v780_v7, %v454_v12 }
  0xaf   : > { %v437_v44 = vmul.f32 %v774_v2, %v409_v11 }
  0xb0   : > { %v493_v22 = vadd.f32 %v485_v15, %v444_v13  ;;  %v391_v15 = vmul.f32 %v771_v61, %v769_v59 }
  0xb1   : > { %v445_v54 = vadd.f32 %v437_v44, %v396_v47 }
  0xb2   : > { %v501_v24 = vmax.f32 %v493_v22, 0.0  ;;  %v399_v21 = vadd.f32 %v391_v15, %v739_v23 }
  0xb4   : > { %510 = vst.msk [vmem:[%s791_s12] sm:$0xff] %vm509_vm0, %v501_v24  ;;  %v394_v24 = vmul.f32 %v771_v61, %v778_v6 }
  0xb5   : > { %v413_v25 = vpop.permute.xlu1 %412  ;;  %v466_v32 = vpop.permute.xlu2 %465 }
  0xb6   : > { %v429_v30 = vpop.permute.xlu0 %428  ;;  %v488_v34 = vmul.f32 %v780_v7, %v466_v32  ;;  %v438_v8 = vmul.f32 %v774_v2, %v413_v25  ;;  %v402_v27 = vadd.f32 %v394_v24, %v761_v49 }
  0xb7   : > { %v442_v17 = vmul.f32 %v774_v2, %v429_v30 }
  0xb8   : > { %v496_v40 = vadd.f32 %v488_v34, %v447_v33  ;;  %v446_v12 = vadd.f32 %v438_v8, %v397_v10 }
  0xb9   : > { %v450_v3 = vadd.f32 %v442_v17, %v401_v0 }
  0xba   : > { %v504_v45 = vmax.f32 %v496_v40, 0.0 }
  0xbc   : > { %513 = vst.msk [vmem:[%s791_s12 + $0x18] sm:$0xff] %vm509_vm0, %v504_v45 }
  0xbd   : > { %v421_v46 = vpop.permute.xlu1 %420  ;;  %v474_v51 = vpop.permute.xlu2 %473 }
  0xbe   : > { %v490_v55 = vmul.f32 %v780_v7, %v474_v51  ;;  %v440_v20 = vmul.f32 %v774_v2, %v421_v46 }
  0xbf   : > { %v458_v14 = vpop.permute.xlu0 %457 }
  0xc0   : > { %v486_v56 = vmul.f32 %v780_v7, %v458_v14  ;;  %v498_v57 = vadd.f32 %v490_v55, %v449_v52  ;;  %v448_v22 = vadd.f32 %v440_v20, %v399_v21 }
  0xc2   : > { %v494_v58 = vadd.f32 %v486_v56, %v445_v54  ;;  %v506_v63 = vmax.f32 %v498_v57, 0.0 }
  0xc4   : > { %v502_v18 = vmax.f32 %v494_v58, 0.0  ;;  %515 = vst.msk [vmem:[%s791_s12 + $0x28] sm:$0xff] %vm509_vm0, %v506_v63 }
  0xc5   : > { %v433_v48 = vpop.permute.xlu1 %432 }
  0xc6   : > { %511 = vst.msk [vmem:[%s791_s12 + $0x8] sm:$0xff] %vm509_vm0, %v502_v18  ;;  %v443_v26 = vmul.f32 %v774_v2, %v433_v48 }
  0xc7   : > { %v478_v1 = vpop.permute.xlu0 %477 }
  0xc8   : > { %v491_v4 = vmul.f32 %v780_v7, %v478_v1  ;;  %v451_v23 = vadd.f32 %v443_v26, %v402_v27 }
  0xca   : > { %v499_v5 = vadd.f32 %v491_v4, %v450_v3 }
  0xcc   : > { %v507_v9 = vmax.f32 %v499_v5, 0.0 }
  0xce   : > { %516 = vst.msk [vmem:[%s791_s12 + $0x30] sm:$0xff] %vm509_vm0, %v507_v9  ;;  %v462_v11 = vpop.permute.xlu1 %461 }
  0xcf   : > { %v487_v13 = vmul.f32 %v780_v7, %v462_v11 }
  0xd1   : > { %v495_v19 = vadd.f32 %v487_v13, %v446_v12 }
  0xd3   : > { %v503_v53 = vmax.f32 %v495_v19, 0.0 }
  0xd5   : > { %512 = vst.msk [vmem:[%s791_s12 + $0x10] sm:$0xff] %vm509_vm0, %v503_v53 }
  0xd6   : > { %v470_v38 = vpop.permute.xlu1 %469 }
  0xd7   : > { %v489_v16 = vmul.f32 %v780_v7, %v470_v38 }
  0xd9   : > { %v497_v25 = vadd.f32 %v489_v16, %v448_v22 }
  0xdb   : > { %v505_v59 = vmax.f32 %v497_v25, 0.0 }
  0xdd   : > { %514 = vst.msk [vmem:[%s791_s12 + $0x20] sm:$0xff] %vm509_vm0, %v505_v59 }
  0xde   : > { %v482_v29 = vpop.permute.xlu1 %481 }
  0xdf   : > { %v492_v30 = vmul.f32 %v780_v7, %v482_v29 }
  0xe1   : > { %v500_v31 = vadd.f32 %v492_v30, %v451_v23 }
  0xe3   : > { %v508_v32 = vmax.f32 %v500_v31, 0.0 }
  0xe5   : > { %517 = vst.msk [vmem:[%s791_s12 + $0x38] sm:$0xff] %vm509_vm0, %v508_v32 }
  0xe6 PF: > { %s15_s18 = sadd.s32 1, %s664_s18  }
  0xe7   : > { %p12_p4 = scmp.ge.s32.totalorder %s15_s18, 4  }
  0xe9   :  { %14 = sbr.rel (!%p12_p4) target bundleno = 1 (0x1), region = 73 }

// kernel: conv_res_block_forward.3
= control target key start
LH: loop header
LB: loop body
LE: loop exit
PB: predicated region body
PF: predicated region fallthrough
CT: control target
= control target key end

     0   :  { %s1081_s12 = smov 0   ;;  %s1389_s0 = inlined_call_operand.vmem [shape: f32[2,4,9,9,4], index: 0, kind: input, shape index: {}]   ;;  %s1390_s1 = inlined_call_operand.vmem [shape: bf16[9,4,8], index: 1, kind: input, shape index: {}]   ;;  %s1391_s2 = inlined_call_operand.vmem [shape: bf16[2,8,8,8], index: 2, kind: output, shape index: {0}]   ;;  %s1392_s3 = inlined_call_operand.vmem [shape: f32[2,2,8], index: 3, kind: output, shape index: {1}]  }
   0x1 LB: > { %s925_s13 = sadd.s32 4294967295, %s1058_s12   ;;  %p929_p0 = scmp.ge.s32.totalorder %s1058_s12, 1  ;;  %s1058_s12 = sphi %s1081_s12, %s14_s12  }
   0x2   : > { %p140_p1 = scmp.lt.s32.totalorder %s1058_s12, 3 }
   0x4   : > { %p141_p2 = pnand %p929_p0, %p140_p1 }
   0x5   : > { %p168_p3 = scmp.lt.s32.totalorder (!%p141_p2), %s925_s13, 1 }
   0x6   : > { %144 = sbr.rel (%p141_p2) target bundleno = 444 (0x1bc), region = 28 }
   0xb   : > { %v942_v0 = vld [vmem:[%s1390_s1 + $0x2] sm:$0x3]  ;;  %vm224_vm0 = vcmask 1041408   ;;  %v195_v2 = vld [vmem:[%s1390_s1] sm:$0x3]  ;;  %s1394_s13 = smov (!%p168_p3, %s925_s13), 1 }
   0xc   : > { %v226_v1 = vsel %vm224_vm0, %v942_v0, 0  ;;  %v951_v3 = vld [vmem:[%s1390_s1 + $0x4] sm:$0x3]  ;;  %v270_v4 = vsel %vm224_vm0, %v195_v2, 0  ;;  %v964_v6 = vld [vmem:[%s1390_s1 + $0x6] sm:$0x3] }
   0xd   : > { %1039 = vmatpush.bf16.msra.mxu1 %v226_v1  ;;  %1040 = vmatpush.bf16.msra.mxu2 %v226_v1  ;;  %v328_v5 = vsel %vm224_vm0, %v951_v3, 0  ;;  %v395_v7 = vsel %vm224_vm0, %v964_v6, 0  ;;  %v977_v8 = vld [vmem:[%s1390_s1 + $0x8] sm:$0x3]  ;;  %s1042_s24 = smul.u32 576, %s1394_s13  ;;  %vm211_vm1 = vcmask 31744  }
   0xe   : > { %1041 = vmatpush.bf16.msra.mxu3 %v226_v1  ;;  %235 = vmatpush.bf16.msra.mxu0 %v226_v1  ;;  %v462_v9 = vsel %vm224_vm0, %v977_v8, 0  ;;  %v1003_v46 = vld [vmem:[%s1390_s1 + $0xc] sm:$0x3]  ;;  %v1016_v48 = vld [vmem:[%s1390_s1 + $0xe] sm:$0x3]  ;;  %s1038_s9 = sshll.u32 %s1394_s13, 5 }
   0xf   : > { %s1115_s27 = scalar_lea.vmem %s1389_s0, %s1042_s24  ;;  %v595_v47 = vsel %vm224_vm0, %v1003_v46, 0  ;;  %v990_v49 = vld [vmem:[%s1390_s1 + $0xa] sm:$0x3]  ;;  %v662_v50 = vsel %vm224_vm0, %v1016_v48, 0  ;;  %v1029_v52 = vld [vmem:[%s1390_s1 + $0x10] sm:$0x3]  ;;  %s1318_s14 = scalar_lea.vmem %s1391_s2, %s1038_s9 }
  0x10   : > { %v1118_v10 = vld [vmem:[%s1115_s27 + $0xb0] sm:$0xff]  ;;  %v1121_v11 = vld [vmem:[%s1115_s27 + $0xc0] sm:$0xff]  ;;  %v528_v51 = vsel %vm224_vm0, %v990_v49, 0  ;;  %v728_v53 = vsel %vm224_vm0, %v1029_v52, 0  ;;  %vm775_vm2 = vcmask 60416   ;;  %vm784_vm3 = vcmask 523264  }
  0x11   : > { %279 = vmatpush.bf16.msrb.mxu1 %v270_v4  ;;  %337 = vmatpush.bf16.msrb.mxu2 %v328_v5  ;;  %v1124_v12 = vld [vmem:[%s1115_s27 + $0xd0] sm:$0xff]  ;;  %v206_v13 = vpack.c.bf16 %v1121_v11, %v1118_v10  ;;  %v1129_v14 = vld [vmem:[%s1115_s27 + $0xe0] sm:$0xff]  ;;  %s933_s15 = sshll.u32 %s1394_s13, 1  ;;  %vm808_vm4 = vcmask 57344  }
  0x12   : > { %404 = vmatpush.bf16.msrb.mxu3 %v395_v7  ;;  %471 = vmatpush.bf16.msrb.mxu0 %v462_v9  ;;  %v1132_v15 = vld [vmem:[%s1115_s27 + $0xf0] sm:$0xff]  ;;  %v1135_v16 = vld [vmem:[%s1115_s27 + $0x100] sm:$0xff]  ;;  %v207_v17 = vpack.c.bf16 %v1129_v14, %v1124_v12  ;;  %s181_s18 = scalar_lea.vmem %s1392_s3, %s933_s15 }
  0x13   : > { %v208_v18 = vpack.c.bf16 %v1135_v16, %v1132_v15  ;;  %v934_v19 = vld [vmem:[%s1115_s27 + $0x90] sm:$0xff]  ;;  %v1143_v20 = vld [vmem:[%s1115_s27 + $0xa0] sm:$0xff]  ;;  %944 = vmatmul.msk.bf16.vlgmr.msra.gmra.mxu1 %vm211_vm1, %v206_v13 }
  0x14   : > { %v205_v21 = vpack.c.bf16 %v1143_v20, %v934_v19  ;;  %945 = vmatmul.msk.bf16.vlgmr.msra.gmra.mxu2 %vm211_vm1, %v207_v17  ;;  %v183_v22 = vld [vmem:[%s1115_s27] sm:$0xff]  ;;  %v1152_v23 = vld [vmem:[%s1115_s27 + $0x10] sm:$0xff]  ;;  %v643_v2 = vpack.c.bf16 %v1118_v10, %v1143_v20 }
  0x15   : > { %946 = vmatmul.msk.bf16.vlgmr.msra.gmra.mxu3 %vm211_vm1, %v208_v18  ;;  %v301_v24 = vld [vmem:[%s1115_s27 + $0x1] sm:$0xff]  ;;  %v1156_v25 = vld [vmem:[%s1115_s27 + $0x11] sm:$0xff]  ;;  %v191_v30 = vpack.c.bf16 %v1152_v23, %v183_v22  ;;  %604 = vmatpush.bf16.msra.mxu2 %v595_v47 }
  0x16   : > { %943 = vmatmul.msk.bf16.vlgmr.msra.gmra.mxu0 %vm211_vm1, %v205_v21  ;;  %v956_v26 = vld [vmem:[%s1115_s27 + $0x120] sm:$0xff]  ;;  %v957_v27 = vld [vmem:[%s1115_s27 + $0x130] sm:$0xff]  ;;  %v309_v31 = vpack.c.bf16 %v1156_v25, %v301_v24  ;;  %671 = vmatpush.bf16.msra.mxu3 %v662_v50 }
  0x17   : > { %v969_v28 = vld [vmem:[%s1115_s27 + $0x1b0] sm:$0xff]  ;;  %v970_v29 = vld [vmem:[%s1115_s27 + $0x1c0] sm:$0xff]  ;;  %v376_v32 = vpack.c.bf16 %v957_v27, %v956_v26  ;;  %537 = vmatpush.bf16.msra.mxu1 %v528_v51  ;;  %737 = vmatpush.bf16.msra.mxu0 %v728_v53 }
  0x18   : > { %v443_v33 = vpack.c.bf16 %v970_v29, %v969_v28  ;;  %v1169_v34 = vld [vmem:[%s1115_s27 + $0x20] sm:$0xff]  ;;  %v1172_v35 = vld [vmem:[%s1115_s27 + $0x30] sm:$0xff] }
  0x19   : > { %v1175_v36 = vld [vmem:[%s1115_s27 + $0x21] sm:$0xff]  ;;  %v1178_v37 = vld [vmem:[%s1115_s27 + $0x31] sm:$0xff]  ;;  %v192_v42 = vpack.c.bf16 %v1172_v35, %v1169_v34  ;;  %v576_v24 = vpack.c.bf16 %v1169_v34, %v1152_v23  ;;  %v644_v23 = vpack.c.bf16 %v1124_v12, %v1121_v11  ;;  %v645_v11 = vpack.c.bf16 %v1132_v15, %v1129_v14 }
  0x1a   : > { %v958_v38 = vld [vmem:[%s1115_s27 + $0x140] sm:$0xff]  ;;  %v959_v39 = vld [vmem:[%s1115_s27 + $0x150] sm:$0xff]  ;;  %v310_v43 = vpack.c.bf16 %v1178_v37, %v1175_v36  ;;  %v709_v26 = vpack.c.bf16 %v1175_v36, %v1156_v25 }
  0x1b   : > { %v971_v40 = vld [vmem:[%s1115_s27 + $0x1d0] sm:$0xff]  ;;  %v972_v41 = vld [vmem:[%s1115_s27 + $0x1e0] sm:$0xff]  ;;  %v377_v44 = vpack.c.bf16 %v959_v39, %v958_v38 }
  0x1c   : > { %v444_v45 = vpack.c.bf16 %v972_v41, %v971_v40  ;;  %v187_v54 = vld [vmem:[%s1115_s27 + $0x40] sm:$0xff]  ;;  %v188_v55 = vld [vmem:[%s1115_s27 + $0x50] sm:$0xff] }
  0x1d   : > { %v305_v56 = vld [vmem:[%s1115_s27 + $0x41] sm:$0xff]  ;;  %v306_v57 = vld [vmem:[%s1115_s27 + $0x51] sm:$0xff]  ;;  %v193_v62 = vpack.c.bf16 %v188_v55, %v187_v54 }
  0x1e   : > { %v960_v58 = vld [vmem:[%s1115_s27 + $0x160] sm:$0xff]  ;;  %v961_v59 = vld [vmem:[%s1115_s27 + $0x170] sm:$0xff]  ;;  %v311_v63 = vpack.c.bf16 %v306_v57, %v305_v56  ;;  %v710_v25 = vpack.c.bf16 %v305_v56, %v1178_v37 }
  0x1f   : > { %v973_v60 = vld [vmem:[%s1115_s27 + $0x1f0] sm:$0xff]  ;;  %v974_v61 = vld [vmem:[%s1115_s27 + $0x200] sm:$0xff]  ;;  %v378_v0 = vpack.c.bf16 %v961_v59, %v960_v58 }
  0x20   : > { %v445_v1 = vpack.c.bf16 %v974_v61, %v973_v60  ;;  %v189_v3 = vld [vmem:[%s1115_s27 + $0x60] sm:$0xff]  ;;  %v190_v4 = vld [vmem:[%s1115_s27 + $0x70] sm:$0xff] }
  0x21   : > { %v307_v5 = vld [vmem:[%s1115_s27 + $0x61] sm:$0xff]  ;;  %v308_v6 = vld [vmem:[%s1115_s27 + $0x71] sm:$0xff]  ;;  %v194_v17 = vpack.c.bf16 %v190_v4, %v189_v3  ;;  %v578_v34 = vpack.c.bf16 %v189_v3, %v188_v55 }
  0x22   : > { %v962_v7 = vld [vmem:[%s1115_s27 + $0x180] sm:$0xff]  ;;  %v963_v8 = vld [vmem:[%s1115_s27 + $0x190] sm:$0xff]  ;;  %v312_v10 = vpack.c.bf16 %v308_v6, %v307_v5  ;;  %v711_v12 = vpack.c.bf16 %v307_v5, %v306_v57 }
  0x23   : > { %947 = vmatmul.msk.bf16.vlgmr.msrb.gmra.mxu1 %vm211_vm1, %v191_v30  ;;  %v975_v9 = vld [vmem:[%s1115_s27 + $0x210] sm:$0xff]  ;;  %v976_v13 = vld [vmem:[%s1115_s27 + $0x220] sm:$0xff]  ;;  %v379_v18 = vpack.c.bf16 %v963_v8, %v962_v7  ;;  %v577_v30 = vpack.c.bf16 %v187_v54, %v1172_v35 }
  0x24   : > { %952 = vmatmul.msk.bf16.vlgmr.msrb.gmra.mxu2 %vm211_vm1, %v309_v31  ;;  %v446_v19 = vpack.c.bf16 %v976_v13, %v975_v9  ;;  %v982_v20 = vld [vmem:[%s1115_s27 + $0x121] sm:$0xff]  ;;  %v983_v21 = vld [vmem:[%s1115_s27 + $0x131] sm:$0xff] }
  0x25   : > { %965 = vmatmul.msk.bf16.vlgmr.msrb.gmra.mxu3 %vm211_vm1, %v376_v32  ;;  %v509_v22 = vpack.c.bf16 %v983_v21, %v982_v20  ;;  %v984_v27 = vld [vmem:[%s1115_s27 + $0x141] sm:$0xff]  ;;  %v985_v28 = vld [vmem:[%s1115_s27 + $0x151] sm:$0xff] }
  0x26   : > { %978 = vmatmul.msk.bf16.vlgmr.msrb.gmra.mxu0 %vm211_vm1, %v443_v33  ;;  %v510_v29 = vpack.c.bf16 %v985_v28, %v984_v27  ;;  %v986_v31 = vld [vmem:[%s1115_s27 + $0x161] sm:$0xff]  ;;  %v987_v32 = vld [vmem:[%s1115_s27 + $0x171] sm:$0xff] }
  0x27   : > { %v511_v33 = vpack.c.bf16 %v987_v32, %v986_v31  ;;  %v988_v35 = vld [vmem:[%s1115_s27 + $0x181] sm:$0xff]  ;;  %v989_v36 = vld [vmem:[%s1115_s27 + $0x191] sm:$0xff] }
  0x28   : > { %v1002_v37 = vld [vmem:[%s1115_s27 + $0x80] sm:$0xff]  ;;  %v1015_v38 = vld [vmem:[%s1115_s27 + $0x110] sm:$0xff]  ;;  %v512_v40 = vpack.c.bf16 %v989_v36, %v988_v35 }
  0x29   : > { %v1028_v39 = vld [vmem:[%s1115_s27 + $0x81] sm:$0xff] }
  0x2a   : > { %v712_v14 = vpack.c.bf16 %v1028_v39, %v308_v6 }
  0x33   : > { %948 = vmatmul.msk.bf16.gmra.mxu1 %vm211_vm1, %v192_v42  ;;  %v579_v42 = vpack.c.bf16 %v1002_v37, %v190_v4 }
  0x34   : > { %953 = vmatmul.msk.bf16.gmra.mxu2 %vm211_vm1, %v310_v43  ;;  %v646_v43 = vpack.c.bf16 %v1015_v38, %v1135_v16 }
  0x35   : > { %966 = vmatmul.msk.bf16.gmra.mxu3 %vm211_vm1, %v377_v44 }
  0x36   : > { %979 = vmatmul.msk.bf16.gmra.mxu0 %vm211_vm1, %v444_v45 }
  0x43   : > { %949 = vmatmul.msk.bf16.gmra.mxu1 %vm211_vm1, %v193_v62 }
  0x44   : > { %954 = vmatmul.msk.bf16.gmra.mxu2 %vm211_vm1, %v311_v63 }
  0x45   : > { %967 = vmatmul.msk.bf16.gmra.mxu3 %vm211_vm1, %v378_v0 }
  0x46   : > { %980 = vmatmul.msk.bf16.gmra.mxu0 %vm211_vm1, %v445_v1 }
  0x53   : > { %950 = vmatmul.msk.bf16.gmra.mxu1 %vm211_vm1, %v194_v17 }
  0x54   : > { %955 = vmatmul.msk.bf16.gmra.mxu2 %vm211_vm1, %v312_v10 }
  0x55   : > { %968 = vmatmul.msk.bf16.gmra.mxu3 %vm211_vm1, %v379_v18 }
  0x56   : > { %981 = vmatmul.msk.bf16.gmra.mxu0 %vm211_vm1, %v446_v19 }
  0x63   : > { %991 = vmatmul.msk.bf16.vlgmr.msra.gmra.mxu1 %vm211_vm1, %v509_v22 }
  0x64   : > { %1004 = vmatmul.msk.bf16.vlgmr.msra.gmra.mxu2 %vm211_vm1, %v576_v24 }
  0x65   : > { %1017 = vmatmul.msk.bf16.vlgmr.msra.gmra.mxu3 %vm211_vm1, %v643_v2 }
  0x66   : > { %1030 = vmatmul.msk.bf16.vlgmr.msra.gmra.mxu0 %vm211_vm1, %v709_v26 }
  0x73   : > { %992 = vmatmul.msk.bf16.gmra.mxu1 %vm211_vm1, %v510_v29 }
  0x74   : > { %1005 = vmatmul.msk.bf16.gmra.mxu2 %vm211_vm1, %v577_v30 }
  0x75   : > { %1018 = vmatmul.msk.bf16.gmra.mxu3 %vm211_vm1, %v644_v23 }
  0x76   : > { %1031 = vmatmul.msk.bf16.gmra.mxu0 %vm211_vm1, %v710_v25 }
  0x83   : > { %993 = vmatmul.msk.bf16.gmra.mxu1 %vm211_vm1, %v511_v33 }
  0x84   : > { %1006 = vmatmul.msk.bf16.gmra.mxu2 %vm211_vm1, %v578_v34 }
  0x85   : > { %1019 = vmatmul.msk.bf16.gmra.mxu3 %vm211_vm1, %v645_v11 }
  0x86   : > { %1032 = vmatmul.msk.bf16.gmra.mxu0 %vm211_vm1, %v711_v12 }
  0x90   : > { %v242_v41 = vpop.f32.mrf.mxu1 }
  0x93   : > { %v237_v15 = vpop.f32.mrf.mxu0  ;;  %994 = vmatmul.msk.bf16.gmra.mxu1 %vm211_vm1, %v512_v40 }
  0x94   : > { %1007 = vmatmul.msk.bf16.gmra.mxu2 %vm211_vm1, %v579_v42 }
  0x95   : > { %1020 = vmatmul.msk.bf16.gmra.mxu3 %vm211_vm1, %v646_v43 }
  0x96   : > { %1033 = vmatmul.msk.bf16.gmra.mxu0 %vm211_vm1, %v712_v14 }
  0x97   : > { %v1272_v44 = vpop.f32.mrf.mxu2 }
  0x98   : > { %v1274_v45 = vpop.f32.mrf.mxu3  ;;  %v1276_v46 = vpop.f32.mrf.mxu1 }
  0x9b   : > { %v239_v47 = vpop.f32.mrf.mxu0 }
  0x9f   : > { %v1278_v48 = vpop.f32.mrf.mxu2 }
  0xa0   : > { %v1280_v16 = vpop.f32.mrf.mxu3  ;;  %v281_v49 = vpop.f32.mrf.mxu1 }
  0xa1   : > { %v282_v19 = vadd.f32 %v281_v49, %v237_v15 }
  0xa3   : > { %v473_v50 = vpop.f32.mrf.mxu0 }
  0xa7   : > { %v339_v51 = vpop.f32.mrf.mxu2 }
  0xa8   : > { %v406_v52 = vpop.f32.mrf.mxu3  ;;  %v283_v53 = vpop.f32.mrf.mxu1  ;;  %v359_v21 = vadd.f32 %v339_v51, %v282_v19 }
  0xa9   : > { %v284_v28 = vadd.f32 %v283_v53, %v239_v47 }
  0xaa   : > { %v426_v26 = vadd.f32 %v406_v52, %v359_v21 }
  0xab   : > { %v475_v54 = vpop.f32.mrf.mxu0 }
  0xac   : > { %v493_v23 = vadd.f32 %v473_v50, %v426_v26 }
  0xaf   : > { %v341_v55 = vpop.f32.mrf.mxu2 }
  0xb0   : > { %v408_v56 = vpop.f32.mrf.mxu3  ;;  %v286_v57 = vpop.f32.mrf.mxu1  ;;  %v360_v30 = vadd.f32 %v341_v55, %v284_v28 }
  0xb1   : > { %v287_v12 = vadd.f32 %v286_v57, %v242_v41 }
  0xb2   : > { %v427_v33 = vadd.f32 %v408_v56, %v360_v30 }
  0xb3   : > { %v478_v58 = vpop.f32.mrf.mxu0 }
  0xb4   : > { %v494_v39 = vadd.f32 %v475_v54, %v427_v33 }
  0xb7   : > { %v344_v59 = vpop.f32.mrf.mxu2 }
  0xb8   : > { %v411_v60 = vpop.f32.mrf.mxu3  ;;  %v288_v61 = vpop.f32.mrf.mxu1  ;;  %v361_v37 = vadd.f32 %v344_v59, %v287_v12 }
  0xb9   : > { %v289_v49 = vadd.f32 %v288_v61, %v1276_v46 }
  0xba   : > { %v428_v14 = vadd.f32 %v411_v60, %v361_v37 }
  0xbb   : > { %v1282_v62 = vpop.f32.mrf.mxu0 }
  0xbc   : > { %v495_v54 = vadd.f32 %v478_v58, %v428_v14 }
  0xbf   : > { %v346_v63 = vpop.f32.mrf.mxu2 }
  0xc0   : > { %v413_v0 = vpop.f32.mrf.mxu3  ;;  %v291_v1 = vpop.f32.mrf.mxu1  ;;  %v362_v52 = vadd.f32 %v346_v63, %v289_v49 }
  0xc1   : > { %v292_v46 = vadd.f32 %v291_v1, %v1272_v44 }
  0xc2   : > { %v429_v60 = vadd.f32 %v413_v0, %v362_v52 }
  0xc3   : > { %v1284_v2 = vpop.f32.mrf.mxu0 }
  0xc4   : > { %v496_v58 = vadd.f32 %v1282_v62, %v429_v60 }
  0xc7   : > { %v349_v3 = vpop.f32.mrf.mxu2 }
  0xc8   : > { %v1286_v4 = vpop.f32.mrf.mxu3  ;;  %v1288_v5 = vpop.f32.mrf.mxu1  ;;  %v363_v63 = vadd.f32 %v349_v3, %v292_v46 }
  0xc9   : > { %v294_v1 = vadd.f32 %v1288_v5, %v1278_v48 }
  0xca   : > { %v430_v0 = vadd.f32 %v1286_v4, %v363_v63 }
  0xcb   : > { %v1290_v6 = vpop.f32.mrf.mxu0 }
  0xcf   : > { %v1292_v7 = vpop.f32.mrf.mxu2 }
  0xd0   : > { %v1294_v8 = vpop.f32.mrf.mxu3  ;;  %v1296_v9 = vpop.f32.mrf.mxu1 }
  0xd3   : > { %v1298_v13 = vpop.f32.mrf.mxu0 }
  0xd7   : > { %v1300_v17 = vpop.f32.mrf.mxu2 }
  0xd8   : > { %v1302_v10 = vpop.f32.mrf.mxu3  ;;  %v1304_v18 = vpop.f32.mrf.mxu1 }
  0xdb   : > { %v1306_v20 = vpop.f32.mrf.mxu0 }
  0xdf   : > { %v1308_v22 = vpop.f32.mrf.mxu2 }
  0xe0   : > { %v1310_v24 = vpop.f32.mrf.mxu3  ;;  %v539_v27 = vpop.f32.mrf.mxu1 }
  0xe1   : > { %v559_v25 = vadd.f32 %v539_v27, %v493_v23 }
  0xe3   : > { %v739_v29 = vpop.f32.mrf.mxu0 }
  0xe7   : > { %v606_v31 = vpop.f32.mrf.mxu2 }
  0xe8   : > { %v673_v32 = vpop.f32.mrf.mxu3  ;;  %v626_v34 = vadd.f32 %v606_v31, %v559_v25  ;;  %v541_v11 = vpop.f32.mrf.mxu1  ;;  %v364_v31 = vadd.f32 %v1292_v7, %v294_v1  ;;  %v297_v7 = vadd.f32 %v1296_v9, %v1274_v45  ;;  %v299_v45 = vadd.f32 %v1304_v18, %v1280_v16 }
  0xe9   : > { %v560_v42 = vadd.f32 %v541_v11, %v494_v39 }
  0xea   : > { %v693_v35 = vadd.f32 %v673_v32, %v626_v34  ;;  %v497_v32 = vadd.f32 %v1284_v2, %v430_v0  ;;  %v365_v2 = vadd.f32 %v1300_v17, %v297_v7  ;;  %v366_v17 = vadd.f32 %v1308_v22, %v299_v45 }
  0xeb   : > { %v741_v36 = vpop.f32.mrf.mxu0 }
  0xec   : > { %v1313_v38 = vadd.f32 %v739_v29, %v693_v35  ;;  %v431_v35 = vadd.f32 %v1294_v8, %v364_v31  ;;  %v432_v8 = vadd.f32 %v1302_v10, %v365_v2  ;;  %v433_v10 = vadd.f32 %v1310_v24, %v366_v17 }
  0xee   : > { %v767_v40 = vpack.c.bf16 %v1313_v38, %v1313_v38  ;;  %v498_v39 = vadd.f32 %v1290_v6, %v431_v35  ;;  %v499_v6 = vadd.f32 %v1298_v13, %v432_v8  ;;  %v500_v22 = vadd.f32 %v1306_v20, %v433_v10 }
  0xef   : > { %v608_v43 = vpop.f32.mrf.mxu2  ;;  %v810_v0 = vmul.f32 %v1313_v38, %v1313_v38 }
  0xf0   : > { %v675_v41 = vpop.f32.mrf.mxu3  ;;  %776 = vst.msk [vmem:[%s1318_s14] sm:$0xf] %vm775_vm2, %v767_v40  ;;  %v627_v15 = vadd.f32 %v608_v43, %v560_v42  ;;  %v544_v47 = vpop.f32.mrf.mxu1 }
  0xf1   : > { %v561_v56 = vadd.f32 %v544_v47, %v495_v54 }
  0xf2   : > { %v694_v50 = vadd.f32 %v675_v41, %v627_v15 }
  0xf3   : > { %v744_v51 = vpop.f32.mrf.mxu0 }
  0xf4   : > { %v1325_v53 = vadd.f32 %v741_v36, %v694_v50 }
  0xf6   : > { %v768_v55 = vpack.c.bf16 %v1325_v53, %v1325_v53 }
  0xf7   : > { %v611_v57 = vpop.f32.mrf.mxu2 }
  0xf8   : > { %v678_v59 = vpop.f32.mrf.mxu3  ;;  %777 = vst.msk [vmem:[%s1318_s14 + $0x4] sm:$0xf] %vm775_vm2, %v768_v55  ;;  %v628_v19 = vadd.f32 %v611_v57, %v561_v56  ;;  %v546_v21 = vpop.f32.mrf.mxu1 }
  0xf9   : > { %v562_v29 = vadd.f32 %v546_v21, %v496_v58 }
  0xfa   : > { %v695_v61 = vadd.f32 %v678_v59, %v628_v19 }
  0xfb   : > { %v746_v26 = vpop.f32.mrf.mxu0 }
  0xfc   : > { %v1332_v27 = vadd.f32 %v744_v51, %v695_v61 }
  0xfe   : > { %v769_v28 = vpack.c.bf16 %v1332_v27, %v1332_v27 }
  0xff   : > { %v613_v30 = vpop.f32.mrf.mxu2 }
 0x100   : > { %v680_v23 = vpop.f32.mrf.mxu3  ;;  %778 = vst.msk [vmem:[%s1318_s14 + $0x8] sm:$0xf] %vm775_vm2, %v769_v28  ;;  %v629_v25 = vadd.f32 %v613_v30, %v562_v29  ;;  %v549_v44 = vpop.f32.mrf.mxu1  ;;  %v812_v30 = vmul.f32 %v1332_v27, %v1332_v27 }
 0x101   : > { %v563_v11 = vadd.f32 %v549_v44, %v497_v32 }
 0x102   : > { %v696_v3 = vadd.f32 %v680_v23, %v629_v25  ;;  %v811_v23 = vmul.f32 %v1325_v53, %v1325_v53  ;;  %v1060_v25 = vmov 1.0  }
 0x103   : > { %v749_v33 = vpop.f32.mrf.mxu0 }
 0x104   : > { %v1343_v62 = vadd.f32 %v746_v26, %v696_v3 }
 0x106   : > { %v770_v34 = vpack.c.bf16 %v1343_v62, %v1343_v62  ;;  %v813_v29 = vmul.f32 %v1343_v62, %v1343_v62 }
 0x107   : > { %v616_v4 = vpop.f32.mrf.mxu2 }
 0x108   : > { %v683_v12 = vpop.f32.mrf.mxu3  ;;  %779 = vst.msk [vmem:[%s1318_s14 + $0xc] sm:$0xf] %vm775_vm2, %v770_v34  ;;  %v630_v48 = vadd.f32 %v616_v4, %v563_v11  ;;  %v551_v5 = vpop.f32.mrf.mxu1 }
 0x109   : > { %v564_v42 = vadd.f32 %v551_v5, %v498_v39 }
 0x10a   : > { %v697_v36 = vadd.f32 %v683_v12, %v630_v48 }
 0x10b   : > { %v751_v43 = vpop.f32.mrf.mxu0 }
 0x10c   : > { %v763_v37 = vadd.f32 %v749_v33, %v697_v36 }
 0x10e   : > { %v771_v40 = vpack.c.bf16 %v763_v37, %v763_v37  ;;  %v814_v28 = vmul.f32 %v763_v37, %v763_v37 }
 0x10f   : > { %v618_v41 = vpop.f32.mrf.mxu2 }
 0x110   : > { %v685_v14 = vpop.f32.mrf.mxu3  ;;  %780 = vst.msk [vmem:[%s1318_s14 + $0x10] sm:$0xf] %vm775_vm2, %v771_v40  ;;  %v631_v15 = vadd.f32 %v618_v41, %v564_v42  ;;  %v554_v47 = vpop.f32.mrf.mxu1 }
 0x111   : > { %v565_v51 = vadd.f32 %v554_v47, %v499_v6 }
 0x112   : > { %v698_v9 = vadd.f32 %v685_v14, %v631_v15 }
 0x113   : > { %v754_v56 = vpop.f32.mrf.mxu0 }
 0x114   : > { %v764_v49 = vadd.f32 %v751_v43, %v698_v9 }
 0x116   : > { %v772_v50 = vpack.c.bf16 %v764_v49, %v764_v49  ;;  %v815_v20 = vmul.f32 %v764_v49, %v764_v49 }
 0x117   : > { %v621_v52 = vpop.f32.mrf.mxu2 }
 0x118   : > { %v688_v54 = vpop.f32.mrf.mxu3  ;;  %781 = vst.msk [vmem:[%s1318_s14 + $0x14] sm:$0xf] %vm775_vm2, %v772_v50  ;;  %v632_v55 = vadd.f32 %v621_v52, %v565_v51  ;;  %v556_v16 = vpop.f32.mrf.mxu1 }
 0x119   : > { %v566_v60 = vadd.f32 %v556_v16, %v500_v22 }
 0x11a   : > { %v699_v57 = vadd.f32 %v688_v54, %v632_v55 }
 0x11b   : > { %v756_v61 = vpop.f32.mrf.mxu0 }
 0x11c   : > { %v765_v18 = vadd.f32 %v754_v56, %v699_v57 }
 0x11e   : > { %v773_v59 = vpack.c.bf16 %v765_v18, %v765_v18  ;;  %v816_v58 = vmul.f32 %v765_v18, %v765_v18 }
 0x11f   : > { %v623_v13 = vpop.f32.mrf.mxu2 }
 0x120   : > { %782 = vst.msk [vmem:[%s1318_s14 + $0x18] sm:$0xf] %vm775_vm2, %v773_v59  ;;  %v633_v19 = vadd.f32 %v623_v13, %v566_v60  ;;  %v690_v21 = vpop.f32.mrf.mxu3 }
 0x122   : > { %v700_v46 = vadd.f32 %v690_v21, %v633_v19 }
 0x124   : > { %v766_v24 = vadd.f32 %v756_v61, %v700_v46 }
 0x126   : > { %v774_v26 = vpack.c.bf16 %v766_v24, %v766_v24  ;;  %v817_v63 = vmul.f32 %v766_v24, %v766_v24  ;;  %796 = vmatpush.msrb.mxu1 %v766_v24 }
 0x128   : > { %783 = vst.msk [vmem:[%s1318_s14 + $0x1c] sm:$0xf] %vm775_vm2, %v774_v26  ;;  %797 = vmatpush.msrb.mxu1 %v765_v18  ;;  %826 = vmatpush.msrb.mxu2 %v817_v63 }
 0x12a   : > { %798 = vmatpush.msrb.mxu1 %v764_v49  ;;  %827 = vmatpush.msrb.mxu2 %v816_v58 }
 0x12c   : > { %799 = vmatpush.msrb.mxu1 %v763_v37  ;;  %828 = vmatpush.msrb.mxu2 %v815_v20 }
 0x12e   : > { %800 = vmatpush.msrb.mxu1 %v1343_v62  ;;  %829 = vmatpush.msrb.mxu2 %v814_v28 }
 0x130   : > { %801 = vmatpush.msrb.mxu1 %v1332_v27  ;;  %830 = vmatpush.msrb.mxu2 %v813_v29 }
 0x132   : > { %802 = vmatpush.msrb.mxu1 %v1325_v53  ;;  %831 = vmatpush.msrb.mxu2 %v812_v30 }
 0x134   : > { %803 = vmatpush.msrb.mxu1 %v1313_v38  ;;  %832 = vmatpush.msrb.mxu2 %v811_v23 }
 0x135   : > { %1034 = vmatmul.msk.f32.vlgmr.msrb.gmra.mxu1 %vm784_vm3, %v1060_v25 }
 0x136   : > { %833 = vmatpush.msrb.mxu2 %v810_v0 }
 0x137   : > { %1035 = vmatmul.msk.f32.vlgmr.msrb.gmra.mxu2 %vm784_vm3, %v1060_v25 }
 0x1b2   : > { %v805_v27 = vpop.f32.mrf.mxu1 }
 0x1b3   : > { %809 = vst.msk [vmem:[%s181_s18] sm:$0x1] %vm808_vm4, %v805_v27 }
 0x1ba   : > { %v835_v53 = vpop.f32.mrf.mxu2 }
 0x1bb   : > { %838 = vst.msk [vmem:[%s181_s18 + $0x1] sm:$0x1] %vm808_vm4, %v835_v53 }
 0x1bc PF: > { %s14_s12 = sadd.s32 1, %s1058_s12  }
 0x1bd   : > { %p11_p4 = scmp.ge.s32.totalorder %s14_s12, 4  }
 0x1bf   :  { %13 = sbr.rel (!%p11_p4) target bundleno = 1 (0x1), region = 83 }

// kernel: conv_res_block_forward.4
= control target key start
LH: loop header
LB: loop body
LE: loop exit
PB: predicated region body
PF: predicated region fallthrough
CT: control target
= control target key end

     0   :  { %s1187_s18 = smov 0   ;;  %s1505_s0 = inlined_call_operand.vmem [shape: bf16[2,8,8,8], index: 0, kind: input, shape index: {}]   ;;  %s1506_s1 = inlined_call_operand.vmem [shape: f32[1,8], index: 1, kind: input, shape index: {}]   ;;  %s1507_s2 = inlined_call_operand.vmem [shape: f32[1,8], index: 2, kind: input, shape index: {}]   ;;  %s1508_s3 = inlined_call_operand.vmem [shape: bf16[9,8,8], index: 3, kind: input, shape index: {}]   ;;  %s1509_s4 = inlined_call_operand.vmem [shape: bf16[2,8,8,8], index: 4, kind: output, shape index: {0}]   ;;  %s1510_s5 = inlined_call_operand.vmem [shape: f32[2,2,8], index: 5, kind: output, shape index: {1}]  }
   0x1 LB: > { %s1053_s19 = sadd.s32 4294967295, %s1153_s18   ;;  %p1057_p0 = scmp.ge.s32.totalorder %s1153_s18, 1  ;;  %s1153_s18 = sphi %s1187_s18, %s16_s18  }
   0x2   : > { %p190_p1 = scmp.lt.s32.totalorder %s1153_s18, 3 }
   0x4   : > { %p191_p2 = pnand %p1057_p0, %p190_p1 }
   0x5   : > { %p222_p3 = scmp.lt.s32.totalorder (!%p191_p2), %s1053_s19, 1 }
   0x6   : > { %194 = sbr.rel (%p191_p2) target bundleno = 469 (0x1d5), region = 36 }
   0xb   : > { %v1063_v0 = vld [vmem:[%s1508_s3 + $0x4] sm:$0xf]  ;;  %vm355_vm0 = vcmask 1043456   ;;  %vm237_vm1 = vcmask 64512   ;;  %vm239_vm2 = vcmask 58368   ;;  %v1155_v2 = vmov 0.0  }
   0xc   : > { %v357_v1 = vsel %vm355_vm0, %v1063_v0, 0  ;;  %243 = vst.msk [vmem:[#allocation2 + $0x20] sm:$0xff] %vm237_vm1, %v1155_v2  ;;  %s1512_s19 = smov (!%p222_p3, %s1053_s19), 1  ;;  %v1213_v3 = vld [vmem:[%s1506_s1] ss:$0 sm:$0xff]  ;;  %vm903_vm3 = vcmask 60416  }
   0xd   : > { %1132 = vmatpush.bf16.msra.mxu1 %v357_v1  ;;  %1133 = vmatpush.bf16.msra.mxu2 %v357_v1  ;;  %244 = vst.msk [vmem:[#allocation2 + $0x28] sm:$0x3] %vm239_vm2, %v1155_v2  ;;  %s1111_s22 = sshll.u32 %s1512_s19, 5  ;;  %v328_v4 = vld [vmem:[%s1508_s3] sm:$0xf]  ;;  %vm912_vm4 = vcmask 523264  }
   0xe   : > { %1134 = vmatpush.bf16.msra.mxu3 %v357_v1  ;;  %366 = vmatpush.bf16.msra.mxu0 %v357_v1  ;;  %245 = vst.msk [vmem:[#allocation2 + $0x30] sm:$0xff] %vm237_vm1, %v1155_v2  ;;  %s226_s27 = scalar_lea.vmem %s1505_s0, %s1111_s22  ;;  %v1072_v5 = vld [vmem:[%s1508_s3 + $0x8] sm:$0xf]  ;;  %v401_v9 = vsel %vm355_vm0, %v328_v4, 0  ;;  %v1234_v12 = vld [vmem:[%s1507_s2] ss:$0 sm:$0xff]  ;;  %s1433_s26 = scalar_lea.vmem %s1509_s4, %s1111_s22 }
   0xf   : > { %246 = vst.msk [vmem:[#allocation2 + $0x38] sm:$0x3] %vm239_vm2, %v1155_v2  ;;  %v1114_v6 = vld [vmem:[%s226_s27] sm:$0xff]   ;;  %v1129_v7 = vld [vmem:[%s226_s27 + $0x8] sm:$0xff]   ;;  %v1130_v8 = vld [vmem:[%s226_s27 + $0x10] sm:$0xff]   ;;  %v459_v17 = vsel %vm355_vm0, %v1072_v5, 0 }
  0x10   : > { %238 = vst.msk [vmem:[#allocation2] sm:$0xff] %vm237_vm1, %v1155_v2  ;;  %v1116_v10 = vunpack.c.h.bf16 %v1114_v6  ;;  %v1119_v11 = vunpack.c.l.bf16 %v1129_v7  ;;  %v1120_v13 = vunpack.c.h.bf16 %v1129_v7  ;;  %v1238_v14 = vld [vmem:[%s226_s27 + $0x18] sm:$0xff]   ;;  %v1077_v15 = vld [vmem:[%s1508_s3 + $0xc] sm:$0xf]  ;;  %v1123_v16 = vunpack.c.l.bf16 %v1130_v8  ;;  %v1082_v21 = vld [vmem:[%s1508_s3 + $0x10] sm:$0xf] }
  0x11   : > { %240 = vst.msk [vmem:[#allocation2 + $0x8] sm:$0x3] %vm239_vm2, %v1155_v2  ;;  %410 = vmatpush.bf16.msrb.mxu1 %v401_v9  ;;  %v1124_v20 = vunpack.c.h.bf16 %v1130_v8  ;;  %v1127_v22 = vunpack.c.l.bf16 %v1238_v14  ;;  %468 = vmatpush.bf16.msrb.mxu2 %v459_v17  ;;  %v525_v23 = vsel %vm355_vm0, %v1077_v15, 0  ;;  %v1115_v27 = vunpack.c.l.bf16 %v1114_v6  ;;  %v1097_v17 = vld [vmem:[%s1508_s3 + $0x1c] sm:$0xf]  ;;  %s1062_s22 = sshll.u32 %s1512_s19, 1 }
  0x12   : > { %241 = vst.msk [vmem:[#allocation2 + $0x10] sm:$0xff] %vm237_vm1, %v1155_v2  ;;  %v280_v18 = vmul.f32 %v1213_v3, %v1116_v10  ;;  %v281_v19 = vmul.f32 %v1213_v3, %v1119_v11  ;;  %v282_v26 = vmul.f32 %v1213_v3, %v1120_v13  ;;  %v283_v28 = vmul.f32 %v1213_v3, %v1123_v16  ;;  %s235_s29 = scalar_lea.vmem %s1510_s5, %s1062_s22 }
  0x13   : > { %242 = vst.msk [vmem:[#allocation2 + $0x18] sm:$0x3] %vm239_vm2, %v1155_v2  ;;  %534 = vmatpush.bf16.msrb.mxu3 %v525_v23  ;;  %v591_v29 = vsel %vm355_vm0, %v1082_v21, 0  ;;  %v284_v32 = vmul.f32 %v1213_v3, %v1124_v20  ;;  %v285_v33 = vmul.f32 %v1213_v3, %v1127_v22  ;;  %v279_v35 = vmul.f32 %v1213_v3, %v1115_v27  ;;  %v1102_v22 = vld [vmem:[%s1508_s3 + $0x20] sm:$0xf] }
  0x14   : > { %247 = vst.msk [vmem:[#allocation2 + $0x40] sm:$0xff] %vm237_vm1, %v1155_v2  ;;  %v292_v24 = vadd.f32 %v1234_v12, %v280_v18  ;;  %v293_v25 = vadd.f32 %v1234_v12, %v281_v19  ;;  %600 = vmatpush.bf16.msrb.mxu0 %v591_v29  ;;  %v294_v34 = vadd.f32 %v1234_v12, %v282_v26  ;;  %v1087_v18 = vld [vmem:[%s1508_s3 + $0x14] sm:$0xf]  ;;  %v790_v20 = vsel %vm355_vm0, %v1097_v17, 0 }
  0x15   : > { %248 = vst.msk [vmem:[#allocation2 + $0x48] sm:$0x3] %vm239_vm2, %v1155_v2  ;;  %v295_v36 = vadd.f32 %v1234_v12, %v283_v28  ;;  %v296_v37 = vadd.f32 %v1234_v12, %v284_v32  ;;  %v297_v38 = vadd.f32 %v1234_v12, %v285_v33  ;;  %v291_v40 = vadd.f32 %v1234_v12, %v279_v35 }
  0x16   : > { %249 = vst.msk [vmem:[#allocation2 + $0x50] sm:$0xff] %vm237_vm1, %v1155_v2  ;;  %v300_v30 = vmax.f32 %v292_v24, 0.0  ;;  %v301_v31 = vmax.f32 %v293_v25, 0.0  ;;  %v302_v39 = vmax.f32 %v294_v34, 0.0  ;;  %v657_v21 = vsel %vm355_vm0, %v1087_v18, 0 }
  0x17   : > { %250 = vst.msk [vmem:[#allocation2 + $0x58] sm:$0x3] %vm239_vm2, %v1155_v2  ;;  %v303_v41 = vmax.f32 %v295_v36, 0.0  ;;  %v304_v42 = vmax.f32 %v296_v37, 0.0  ;;  %v305_v44 = vmax.f32 %v297_v38, 0.0  ;;  %v299_v46 = vmax.f32 %v291_v40, 0.0 }
  0x18   : > { %251 = vst.msk [vmem:[#allocation2 + $0x60] sm:$0xff] %vm237_vm1, %v1155_v2  ;;  %v329_v52 = vld [vmem:[#allocation2 + $0x1] sm:$0xff]  ;;  %v856_v23 = vsel %vm355_vm0, %v1102_v22, 0  ;;  %vm936_vm5 = vcmask 57344  }
  0x19   : > { %252 = vst.msk [vmem:[#allocation2 + $0x68] sm:$0x3] %vm239_vm2, %v1155_v2  ;;  %v316_v57 = vld [vmem:[#allocation2] sm:$0xff] }
  0x1a   : > { %309 = vst.msk [vmem:[#allocation2 + $0x21] sm:$0xff] %vm237_vm1, %v300_v30  ;;  %v432_v60 = vld [vmem:[#allocation2 + $0x2] sm:$0xff] }
  0x1b   : > { %310 = vst.msk [vmem:[#allocation2 + $0x31] sm:$0xff] %vm237_vm1, %v301_v31 }
  0x1c   : > { %253 = vst.msk [vmem:[#allocation2 + $0x70] sm:$0xff] %vm237_vm1, %v1155_v2 }
  0x1d   : > { %254 = vst.msk [vmem:[#allocation2 + $0x78] sm:$0x3] %vm239_vm2, %v1155_v2 }
  0x1e   : > { %255 = vst.msk [vmem:[#allocation2 + $0x80] sm:$0xff] %vm237_vm1, %v1155_v2 }
  0x1f   : > { %256 = vst.msk [vmem:[#allocation2 + $0x88] sm:$0x3] %vm239_vm2, %v1155_v2 }
  0x20   : > { %257 = vst.msk [vmem:[#allocation2 + $0x90] sm:$0xff] %vm237_vm1, %v1155_v2 }
  0x21   : > { %v331_v43 = vld [vmem:[#allocation2 + $0x21] sm:$0xff]  ;;  %258 = vst.msk [vmem:[#allocation2 + $0x98] sm:$0x3] %vm239_vm2, %v1155_v2  ;;  %v1128_v2 = vunpack.c.h.bf16 %v1238_v14 }
  0x22   : > { %v332_v45 = vld [vmem:[#allocation2 + $0x31] sm:$0xff]  ;;  %311 = vst.msk [vmem:[#allocation2 + $0x41] sm:$0xff] %vm237_vm1, %v302_v39  ;;  %v499_v62 = vld [vmem:[#allocation2 + $0x20] sm:$0xff] }
  0x23   : > { %v1293_v47 = vpack.c.bf16 %v332_v45, %v331_v43  ;;  %312 = vst.msk [vmem:[#allocation2 + $0x51] sm:$0xff] %vm237_vm1, %v303_v41  ;;  %v319_v4 = vld [vmem:[#allocation2 + $0x30] sm:$0xff]  ;;  %v286_v5 = vmul.f32 %v1213_v3, %v1128_v2  ;;  %v434_v9 = vld [vmem:[#allocation2 + $0x22] sm:$0xff]  ;;  %v1092_v3 = vld [vmem:[%s1508_s3 + $0x18] sm:$0xf] }
  0x24   : > { %313 = vst.msk [vmem:[#allocation2 + $0x61] sm:$0xff] %vm237_vm1, %v304_v42  ;;  %v325_v6 = vpack.c.bf16 %v319_v4, %v499_v62  ;;  %v435_v10 = vld [vmem:[#allocation2 + $0x32] sm:$0xff] }
  0x25   : > { %1065 = vmatmul.msk.bf16.vlgmr.msra.gmra.mxu1 %vm237_vm1, %v1293_v47  ;;  %314 = vst.msk [vmem:[#allocation2 + $0x71] sm:$0xff] %vm237_vm1, %v305_v44  ;;  %v298_v7 = vadd.f32 %v1234_v12, %v286_v5  ;;  %v441_v13 = vpack.c.bf16 %v435_v10, %v434_v9  ;;  %v724_v12 = vsel %vm355_vm0, %v1092_v3, 0 }
  0x26   : > { %308 = vst.msk [vmem:[#allocation2 + $0x11] sm:$0xff] %vm237_vm1, %v299_v46  ;;  %666 = vmatpush.bf16.msra.mxu1 %v657_v21 }
  0x27   : > { %v306_v8 = vmax.f32 %v298_v7, 0.0 }
  0x28   : > { %v770_v46 = vld [vmem:[#allocation2 + $0x91] sm:$0xff] }
  0x29   : > { %v333_v48 = vld [vmem:[#allocation2 + $0x41] sm:$0xff]  ;;  %315 = vst.msk [vmem:[#allocation2 + $0x81] sm:$0xff] %vm237_vm1, %v306_v8 }
  0x2a   : > { %v1301_v49 = vld [vmem:[#allocation2 + $0x51] sm:$0xff]  ;;  %v501_v11 = vld [vmem:[#allocation2 + $0x40] sm:$0xff]  ;;  %v573_v15 = vpack.c.bf16 %v333_v48, %v332_v45 }
  0x2b   : > { %v1304_v50 = vpack.c.bf16 %v1301_v49, %v333_v48  ;;  %v1306_v51 = vld [vmem:[#allocation2 + $0x61] sm:$0xff]  ;;  %v507_v14 = vpack.c.bf16 %v501_v11, %v319_v4  ;;  %v321_v16 = vld [vmem:[#allocation2 + $0x50] sm:$0xff] }
  0x2c   : > { %v1308_v53 = vld [vmem:[#allocation2 + $0x71] sm:$0xff]  ;;  %v326_v19 = vpack.c.bf16 %v321_v16, %v501_v11  ;;  %v436_v24 = vld [vmem:[#allocation2 + $0x42] sm:$0xff]  ;;  %v574_v29 = vpack.c.bf16 %v1306_v51, %v1301_v49 }
  0x2d   : > { %1066 = vmatmul.msk.bf16.vlgmr.msra.gmra.mxu2 %vm237_vm1, %v1304_v50  ;;  %v1314_v54 = vpack.c.bf16 %v1308_v53, %v1306_v51  ;;  %v330_v55 = vld [vmem:[#allocation2 + $0x11] sm:$0xff]  ;;  %v503_v26 = vld [vmem:[#allocation2 + $0x60] sm:$0xff]  ;;  %v639_v40 = vpack.c.bf16 %v436_v24, %v435_v10 }
  0x2e   : > { %v337_v56 = vpack.c.bf16 %v330_v55, %v329_v52  ;;  %v317_v58 = vld [vmem:[#allocation2 + $0x10] sm:$0xff]  ;;  %v572_v1 = vpack.c.bf16 %v331_v43, %v330_v55  ;;  %733 = vmatpush.bf16.msra.mxu2 %v724_v12  ;;  %v508_v28 = vpack.c.bf16 %v503_v26, %v321_v16  ;;  %v438_v32 = vld [vmem:[#allocation2 + $0x62] sm:$0xff] }
  0x2f   : > { %1067 = vmatmul.msk.bf16.vlgmr.msra.gmra.mxu3 %vm237_vm1, %v1314_v54  ;;  %v324_v59 = vpack.c.bf16 %v317_v58, %v316_v57  ;;  %v1320_v61 = vld [vmem:[#allocation2 + $0x12] sm:$0xff]  ;;  %v506_v0 = vpack.c.bf16 %v499_v62, %v317_v58 }
  0x30   : > { %1064 = vmatmul.msk.bf16.vlgmr.msra.gmra.mxu0 %vm237_vm1, %v337_v56  ;;  %v440_v63 = vpack.c.bf16 %v1320_v61, %v432_v60  ;;  %799 = vmatpush.bf16.msra.mxu3 %v790_v20  ;;  %v437_v25 = vld [vmem:[#allocation2 + $0x52] sm:$0xff]  ;;  %v505_v34 = vld [vmem:[#allocation2 + $0x80] sm:$0xff]  ;;  %v638_v39 = vpack.c.bf16 %v434_v9, %v1320_v61 }
  0x31   : > { %865 = vmatpush.bf16.msra.mxu0 %v856_v23  ;;  %v442_v27 = vpack.c.bf16 %v437_v25, %v436_v24  ;;  %v323_v30 = vld [vmem:[#allocation2 + $0x70] sm:$0xff]  ;;  %v571_v36 = vld [vmem:[#allocation2 + $0x81] sm:$0xff]  ;;  %v640_v41 = vpack.c.bf16 %v438_v32, %v437_v25 }
  0x32   : > { %v327_v31 = vpack.c.bf16 %v323_v30, %v503_v26  ;;  %v439_v33 = vld [vmem:[#allocation2 + $0x72] sm:$0xff]  ;;  %v509_v37 = vpack.c.bf16 %v505_v34, %v323_v30  ;;  %v575_v38 = vpack.c.bf16 %v571_v36, %v1308_v53  ;;  %v637_v42 = vld [vmem:[#allocation2 + $0x82] sm:$0xff] }
  0x33   : > { %v443_v35 = vpack.c.bf16 %v439_v33, %v438_v32  ;;  %v641_v43 = vpack.c.bf16 %v637_v42, %v439_v33  ;;  %v704_v45 = vld [vmem:[#allocation2 + $0x90] sm:$0xff] }
  0x34   : > { %v836_v48 = vld [vmem:[#allocation2 + $0x92] sm:$0xff] }
  0x35   : > { %1068 = vmatmul.msk.bf16.vlgmr.msrb.gmra.mxu1 %vm237_vm1, %v324_v59  ;;  %v840_v51 = vpack.c.bf16 %v836_v48, %v637_v42 }
  0x3d   : > { %1073 = vmatmul.msk.bf16.vlgmr.msrb.gmra.mxu2 %vm237_vm1, %v440_v63 }
  0x3f   : > { %1078 = vmatmul.msk.bf16.vlgmr.msrb.gmra.mxu3 %vm237_vm1, %v506_v0 }
  0x40   : > { %1083 = vmatmul.msk.bf16.vlgmr.msrb.gmra.mxu0 %vm237_vm1, %v572_v1 }
  0x45   : > { %1069 = vmatmul.msk.bf16.gmra.mxu1 %vm237_vm1, %v325_v6 }
  0x4d   : > { %1074 = vmatmul.msk.bf16.gmra.mxu2 %vm237_vm1, %v441_v13 }
  0x4f   : > { %1079 = vmatmul.msk.bf16.gmra.mxu3 %vm237_vm1, %v507_v14 }
  0x50   : > { %1084 = vmatmul.msk.bf16.gmra.mxu0 %vm237_vm1, %v573_v15 }
  0x55   : > { %1070 = vmatmul.msk.bf16.gmra.mxu1 %vm237_vm1, %v326_v19 }
  0x5d   : > { %1075 = vmatmul.msk.bf16.gmra.mxu2 %vm237_vm1, %v442_v27 }
  0x5f   : > { %1080 = vmatmul.msk.bf16.gmra.mxu3 %vm237_vm1, %v508_v28 }
  0x60   : > { %1085 = vmatmul.msk.bf16.gmra.mxu0 %vm237_vm1, %v574_v29 }
  0x65   : > { %1071 = vmatmul.msk.bf16.gmra.mxu1 %vm237_vm1, %v327_v31 }
  0x6d   : > { %1076 = vmatmul.msk.bf16.gmra.mxu2 %vm237_vm1, %v443_v35 }
  0x6f   : > { %1081 = vmatmul.msk.bf16.gmra.mxu3 %vm237_vm1, %v509_v37 }
  0x70   : > { %1086 = vmatmul.msk.bf16.gmra.mxu0 %vm237_vm1, %v575_v38 }
  0x75   : > { %1088 = vmatmul.msk.bf16.vlgmr.msra.gmra.mxu1 %vm237_vm1, %v638_v39 }
  0x7d   : > { %1093 = vmatmul.msk.bf16.vlgmr.msra.gmra.mxu2 %vm237_vm1, %v325_v6 }
  0x7f   : > { %1098 = vmatmul.msk.bf16.vlgmr.msra.gmra.mxu3 %vm237_vm1, %v1293_v47  ;;  %v708_v47 = vpack.c.bf16 %v704_v45, %v505_v34 }
  0x80   : > { %1103 = vmatmul.msk.bf16.vlgmr.msra.gmra.mxu0 %vm237_vm1, %v441_v13 }
  0x85   : > { %1089 = vmatmul.msk.bf16.gmra.mxu1 %vm237_vm1, %v639_v40 }
  0x8d   : > { %1094 = vmatmul.msk.bf16.gmra.mxu2 %vm237_vm1, %v326_v19 }
  0x8f   : > { %1099 = vmatmul.msk.bf16.gmra.mxu3 %vm237_vm1, %v1304_v50  ;;  %v774_v50 = vpack.c.bf16 %v770_v46, %v571_v36 }
  0x90   : > { %1104 = vmatmul.msk.bf16.gmra.mxu0 %vm237_vm1, %v442_v27 }
  0x95   : > { %1090 = vmatmul.msk.bf16.gmra.mxu1 %vm237_vm1, %v640_v41 }
  0x9d   : > { %1095 = vmatmul.msk.bf16.gmra.mxu2 %vm237_vm1, %v327_v31 }
  0x9f   : > { %1100 = vmatmul.msk.bf16.gmra.mxu3 %vm237_vm1, %v1314_v54 }
  0xa0   : > { %1105 = vmatmul.msk.bf16.gmra.mxu0 %vm237_vm1, %v443_v35 }
  0xa2   : > { %v1377_v44 = vpop.f32.mrf.mxu1 }
  0xa5   : > { %1091 = vmatmul.msk.bf16.gmra.mxu1 %vm237_vm1, %v641_v43 }
  0xaa   : > { %v1380_v49 = vpop.f32.mrf.mxu1 }
  0xad   : > { %v368_v52 = vpop.f32.mrf.mxu0  ;;  %1096 = vmatmul.msk.bf16.gmra.mxu2 %vm237_vm1, %v708_v47 }
  0xaf   : > { %1101 = vmatmul.msk.bf16.gmra.mxu3 %vm237_vm1, %v774_v50 }
  0xb0   : > { %1106 = vmatmul.msk.bf16.gmra.mxu0 %vm237_vm1, %v840_v51  ;;  %v1385_v53 = vpop.f32.mrf.mxu2 }
  0xb2   : > { %v1387_v54 = vpop.f32.mrf.mxu3  ;;  %v412_v55 = vpop.f32.mrf.mxu1 }
  0xb3   : > { %v413_v24 = vadd.f32 %v412_v55, %v368_v52 }
  0xb5   : > { %v370_v56 = vpop.f32.mrf.mxu0 }
  0xb8   : > { %v1389_v57 = vpop.f32.mrf.mxu2 }
  0xba   : > { %v1391_v58 = vpop.f32.mrf.mxu3  ;;  %v414_v59 = vpop.f32.mrf.mxu1 }
  0xbb   : > { %v415_v31 = vadd.f32 %v414_v59, %v370_v56 }
  0xbd   : > { %v602_v60 = vpop.f32.mrf.mxu0 }
  0xc0   : > { %v470_v61 = vpop.f32.mrf.mxu2 }
  0xc1   : > { %v490_v25 = vadd.f32 %v470_v61, %v413_v24 }
  0xc2   : > { %v536_v62 = vpop.f32.mrf.mxu3  ;;  %v417_v63 = vpop.f32.mrf.mxu1 }
  0xc3   : > { %v556_v28 = vadd.f32 %v536_v62, %v490_v25  ;;  %v418_v41 = vadd.f32 %v417_v63, %v1377_v44 }
  0xc5   : > { %v604_v0 = vpop.f32.mrf.mxu0  ;;  %v622_v33 = vadd.f32 %v602_v60, %v556_v28 }
  0xc8   : > { %v472_v1 = vpop.f32.mrf.mxu2 }
  0xc9   : > { %v491_v32 = vadd.f32 %v472_v1, %v415_v31 }
  0xca   : > { %v538_v2 = vpop.f32.mrf.mxu3  ;;  %v419_v4 = vpop.f32.mrf.mxu1 }
  0xcb   : > { %v557_v37 = vadd.f32 %v538_v2, %v491_v32  ;;  %v420_v56 = vadd.f32 %v419_v4, %v1380_v49 }
  0xcd   : > { %v607_v5 = vpop.f32.mrf.mxu0  ;;  %v623_v46 = vadd.f32 %v604_v0, %v557_v37 }
  0xd0   : > { %v475_v6 = vpop.f32.mrf.mxu2 }
  0xd1   : > { %v492_v43 = vadd.f32 %v475_v6, %v418_v41 }
  0xd2   : > { %v541_v7 = vpop.f32.mrf.mxu3  ;;  %v1393_v8 = vpop.f32.mrf.mxu1 }
  0xd3   : > { %v558_v44 = vadd.f32 %v541_v7, %v492_v43  ;;  %v423_v49 = vadd.f32 %v1393_v8, %v1385_v53 }
  0xd5   : > { %v1395_v9 = vpop.f32.mrf.mxu0  ;;  %v624_v63 = vadd.f32 %v607_v5, %v558_v44 }
  0xd8   : > { %v477_v10 = vpop.f32.mrf.mxu2 }
  0xd9   : > { %v493_v61 = vadd.f32 %v477_v10, %v420_v56 }
  0xda   : > { %v543_v11 = vpop.f32.mrf.mxu3  ;;  %v1397_v13 = vpop.f32.mrf.mxu1 }
  0xdb   : > { %v559_v7 = vadd.f32 %v543_v11, %v493_v61  ;;  %v425_v8 = vadd.f32 %v1397_v13, %v1389_v57 }
  0xdd   : > { %v1399_v14 = vpop.f32.mrf.mxu0  ;;  %v625_v5 = vadd.f32 %v1395_v9, %v559_v7 }
  0xe0   : > { %v480_v15 = vpop.f32.mrf.mxu2 }
  0xe1   : > { %v494_v10 = vadd.f32 %v480_v15, %v423_v49 }
  0xe2   : > { %v1401_v16 = vpop.f32.mrf.mxu3  ;;  %v1403_v3 = vpop.f32.mrf.mxu1 }
  0xe5   : > { %v1405_v12 = vpop.f32.mrf.mxu0 }
  0xe8   : > { %v1407_v17 = vpop.f32.mrf.mxu2 }
  0xe9   : > { %v495_v9 = vadd.f32 %v1407_v17, %v425_v8  ;;  %v428_v17 = vadd.f32 %v1403_v3, %v1387_v54 }
  0xea   : > { %v1409_v18 = vpop.f32.mrf.mxu3  ;;  %v1411_v19 = vpop.f32.mrf.mxu1 }
  0xeb   : > { %v561_v41 = vadd.f32 %v1409_v18, %v495_v9  ;;  %v430_v54 = vadd.f32 %v1411_v19, %v1391_v58 }
  0xed   : > { %v1413_v20 = vpop.f32.mrf.mxu0 }
  0xf0   : > { %v1415_v21 = vpop.f32.mrf.mxu2 }
  0xf2   : > { %v1417_v22 = vpop.f32.mrf.mxu3  ;;  %v668_v23 = vpop.f32.mrf.mxu1 }
  0xf3   : > { %v688_v35 = vadd.f32 %v668_v23, %v622_v33  ;;  %v560_v33 = vadd.f32 %v1401_v16, %v494_v10 }
  0xf5   : > { %v1419_v26 = vpop.f32.mrf.mxu0 }
  0xf8   : > { %v1421_v27 = vpop.f32.mrf.mxu2 }
  0xfa   : > { %v1423_v29 = vpop.f32.mrf.mxu3  ;;  %v670_v30 = vpop.f32.mrf.mxu1 }
  0xfb   : > { %v689_v50 = vadd.f32 %v670_v30, %v623_v46  ;;  %v627_v46 = vadd.f32 %v1405_v12, %v561_v41 }
  0xfd   : > { %v867_v34 = vpop.f32.mrf.mxu0 }
 0x100   : > { %v735_v36 = vpop.f32.mrf.mxu2 }
 0x101   : > { %v755_v38 = vadd.f32 %v735_v36, %v688_v35  ;;  %v626_v36 = vadd.f32 %v1399_v14, %v560_v33  ;;  %v496_v14 = vadd.f32 %v1415_v21, %v428_v17  ;;  %v497_v21 = vadd.f32 %v1421_v27, %v430_v54 }
 0x102   : > { %v801_v39 = vpop.f32.mrf.mxu3  ;;  %v673_v40 = vpop.f32.mrf.mxu1 }
 0x103   : > { %v821_v42 = vadd.f32 %v801_v39, %v755_v38  ;;  %v690_v2 = vadd.f32 %v673_v40, %v624_v63  ;;  %v562_v18 = vadd.f32 %v1417_v22, %v496_v14  ;;  %v563_v22 = vadd.f32 %v1423_v29, %v497_v21 }
 0x105   : > { %v1426_v45 = vadd.f32 %v867_v34, %v821_v42  ;;  %v869_v47 = vpop.f32.mrf.mxu0  ;;  %v628_v12 = vadd.f32 %v1413_v20, %v562_v18  ;;  %v629_v27 = vadd.f32 %v1419_v26, %v563_v22 }
 0x107   : > { %v895_v48 = vpack.c.bf16 %v1426_v45, %v1426_v45  ;;  %v938_v33 = vmul.f32 %v1426_v45, %v1426_v45 }
 0x108   : > { %v737_v51 = vpop.f32.mrf.mxu2 }
 0x109   : > { %904 = vst.msk [vmem:[%s1433_s26] sm:$0xf] %vm903_vm3, %v895_v48  ;;  %v756_v52 = vadd.f32 %v737_v51, %v689_v50 }
 0x10a   : > { %v803_v55 = vpop.f32.mrf.mxu3  ;;  %v675_v60 = vpop.f32.mrf.mxu1 }
 0x10b   : > { %v822_v59 = vadd.f32 %v803_v55, %v756_v52  ;;  %v691_v32 = vadd.f32 %v675_v60, %v625_v5 }
 0x10d   : > { %v1440_v62 = vadd.f32 %v869_v47, %v822_v59  ;;  %v872_v0 = vpop.f32.mrf.mxu0 }
 0x10f   : > { %v896_v1 = vpack.c.bf16 %v1440_v62, %v1440_v62 }
 0x110   : > { %v740_v6 = vpop.f32.mrf.mxu2 }
 0x111   : > { %905 = vst.msk [vmem:[%s1433_s26 + $0x4] sm:$0xf] %vm903_vm3, %v896_v1  ;;  %v757_v23 = vadd.f32 %v740_v6, %v690_v2 }
 0x112   : > { %v806_v24 = vpop.f32.mrf.mxu3  ;;  %v678_v30 = vpop.f32.mrf.mxu1 }
 0x113   : > { %v823_v4 = vadd.f32 %v806_v24, %v757_v23  ;;  %v692_v39 = vadd.f32 %v678_v30, %v626_v36 }
 0x115   : > { %v1448_v25 = vadd.f32 %v872_v0, %v823_v4  ;;  %v874_v28 = vpop.f32.mrf.mxu0 }
 0x117   : > { %v897_v31 = vpack.c.bf16 %v1448_v25, %v1448_v25 }
 0x118   : > { %v742_v11 = vpop.f32.mrf.mxu2 }
 0x119   : > { %906 = vst.msk [vmem:[%s1433_s26 + $0x8] sm:$0xf] %vm903_vm3, %v897_v31  ;;  %v758_v34 = vadd.f32 %v742_v11, %v691_v32  ;;  %v940_v32 = vmul.f32 %v1448_v25, %v1448_v25  ;;  %v939_v11 = vmul.f32 %v1440_v62, %v1440_v62 }
 0x11a   : > { %v808_v53 = vpop.f32.mrf.mxu3  ;;  %v680_v40 = vpop.f32.mrf.mxu1 }
 0x11b   : > { %v824_v15 = vadd.f32 %v808_v53, %v758_v34  ;;  %v693_v48 = vadd.f32 %v680_v40, %v627_v46  ;;  %v1156_v34 = vmov 1.0  }
 0x11d   : > { %v1459_v35 = vadd.f32 %v874_v28, %v824_v15  ;;  %v877_v37 = vpop.f32.mrf.mxu0 }
 0x11f   : > { %v898_v38 = vpack.c.bf16 %v1459_v35, %v1459_v35  ;;  %v941_v31 = vmul.f32 %v1459_v35, %v1459_v35 }
 0x120   : > { %v745_v16 = vpop.f32.mrf.mxu2 }
 0x121   : > { %907 = vst.msk [vmem:[%s1433_s26 + $0xc] sm:$0xf] %vm903_vm3, %v898_v38  ;;  %v759_v57 = vadd.f32 %v745_v16, %v692_v39 }
 0x122   : > { %v811_v13 = vpop.f32.mrf.mxu3  ;;  %v683_v55 = vpop.f32.mrf.mxu1 }
 0x123   : > { %v825_v42 = vadd.f32 %v811_v13, %v759_v57  ;;  %v694_v60 = vadd.f32 %v683_v55, %v628_v12 }
 0x125   : > { %v891_v43 = vadd.f32 %v877_v37, %v825_v42  ;;  %v879_v50 = vpop.f32.mrf.mxu0 }
 0x127   : > { %v899_v47 = vpack.c.bf16 %v891_v43, %v891_v43  ;;  %v942_v30 = vmul.f32 %v891_v43, %v891_v43 }
 0x128   : > { %v747_v51 = vpop.f32.mrf.mxu2 }
 0x129   : > { %908 = vst.msk [vmem:[%s1433_s26 + $0x10] sm:$0xf] %vm903_vm3, %v899_v47  ;;  %v760_v44 = vadd.f32 %v747_v51, %v693_v48 }
 0x12a   : > { %v813_v52 = vpop.f32.mrf.mxu3  ;;  %v685_v58 = vpop.f32.mrf.mxu1 }
 0x12b   : > { %v826_v3 = vadd.f32 %v813_v52, %v760_v44  ;;  %v695_v7 = vadd.f32 %v685_v58, %v629_v27 }
 0x12d   : > { %v892_v56 = vadd.f32 %v879_v50, %v826_v3  ;;  %v882_v0 = vpop.f32.mrf.mxu0 }
 0x12f   : > { %v900_v59 = vpack.c.bf16 %v892_v56, %v892_v56  ;;  %v943_v26 = vmul.f32 %v892_v56, %v892_v56 }
 0x130   : > { %v750_v61 = vpop.f32.mrf.mxu2 }
 0x131   : > { %909 = vst.msk [vmem:[%s1433_s26 + $0x14] sm:$0xf] %vm903_vm3, %v900_v59  ;;  %v761_v63 = vadd.f32 %v750_v61, %v694_v60 }
 0x132   : > { %v816_v1 = vpop.f32.mrf.mxu3 }
 0x133   : > { %v827_v2 = vadd.f32 %v816_v1, %v761_v63 }
 0x135   : > { %v893_v19 = vadd.f32 %v882_v0, %v827_v2  ;;  %v884_v29 = vpop.f32.mrf.mxu0 }
 0x137   : > { %v901_v6 = vpack.c.bf16 %v893_v19, %v893_v19  ;;  %v944_v28 = vmul.f32 %v893_v19, %v893_v19 }
 0x138   : > { %v752_v20 = vpop.f32.mrf.mxu2 }
 0x139   : > { %910 = vst.msk [vmem:[%s1433_s26 + $0x18] sm:$0xf] %vm903_vm3, %v901_v6  ;;  %v762_v23 = vadd.f32 %v752_v20, %v695_v7 }
 0x13a   : > { %v818_v24 = vpop.f32.mrf.mxu3 }
 0x13b   : > { %v828_v49 = vadd.f32 %v818_v24, %v762_v23 }
 0x13d   : > { %v894_v4 = vadd.f32 %v884_v29, %v828_v49 }
 0x13f   : > { %v902_v10 = vpack.c.bf16 %v894_v4, %v894_v4  ;;  %v945_v5 = vmul.f32 %v894_v4, %v894_v4  ;;  %924 = vmatpush.msrb.mxu1 %v894_v4 }
 0x141   : > { %911 = vst.msk [vmem:[%s1433_s26 + $0x1c] sm:$0xf] %vm903_vm3, %v902_v10  ;;  %925 = vmatpush.msrb.mxu1 %v893_v19  ;;  %954 = vmatpush.msrb.mxu2 %v945_v5 }
 0x143   : > { %926 = vmatpush.msrb.mxu1 %v892_v56  ;;  %955 = vmatpush.msrb.mxu2 %v944_v28 }
 0x145   : > { %927 = vmatpush.msrb.mxu1 %v891_v43  ;;  %956 = vmatpush.msrb.mxu2 %v943_v26 }
 0x147   : > { %928 = vmatpush.msrb.mxu1 %v1459_v35  ;;  %957 = vmatpush.msrb.mxu2 %v942_v30 }
 0x149   : > { %929 = vmatpush.msrb.mxu1 %v1448_v25  ;;  %958 = vmatpush.msrb.mxu2 %v941_v31 }
 0x14b   : > { %930 = vmatpush.msrb.mxu1 %v1440_v62  ;;  %959 = vmatpush.msrb.mxu2 %v940_v32 }
 0x14d   : > { %931 = vmatpush.msrb.mxu1 %v1426_v45  ;;  %960 = vmatpush.msrb.mxu2 %v939_v11 }
 0x14e   : > { %1107 = vmatmul.msk.f32.vlgmr.msrb.gmra.mxu1 %vm912_vm4, %v1156_v34 }
 0x14f   : > { %961 = vmatpush.msrb.mxu2 %v938_v33 }
 0x150   : > { %1108 = vmatmul.msk.f32.vlgmr.msrb.gmra.mxu2 %vm912_vm4, %v1156_v34 }
 0x1cb   : > { %v933_v25 = vpop.f32.mrf.mxu1 }
 0x1cc   : > { %937 = vst.msk [vmem:[%s235_s29] sm:$0x1] %vm936_vm5, %v933_v25 }
 0x1d3   : > { %v963_v62 = vpop.f32.mrf.mxu2 }
 0x1d4   : > { %966 = vst.msk [vmem:[%s235_s29 + $0x1] sm:$0x1] %vm936_vm5, %v963_v62 }
 0x1d5 PF: > { %s16_s18 = sadd.s32 1, %s1153_s18  }
 0x1d6   : > { %p13_p4 = scmp.ge.s32.totalorder %s16_s18, 4  }
 0x1d8   :  { %15 = sbr.rel (!%p13_p4) target bundleno = 1 (0x1), region = 88 }

</bundles_post_ra>
